<compile_context>
chip_gen: v5e
topology: v5e:2x2
jax: 0.10.0
libtpu: 0.0.40
codegen_flags: <defaults>
</compile_context>

<pallas_src>
import functools

import jax
import jax.numpy as jnp
from jax.experimental import pallas as pl
from jax.experimental.pallas import tpu as pltpu

LANES = 128


def _round_up(x, m):
    return (x + m - 1) // m * m


def _cdiv(a, b):
    return -(-a // b)


def _sepconv_body(xm_ref, xh_ref, wdw_ref, shift_ref, wpw_ref, bpw_ref,
                  o_ref, y_ref, *, kernel_size, stride, row_chunk):
    # xm_ref:    (TH*stride, Wp, Cp)   bf16  non-overlapping input row tile
    # xh_ref:    (HALO, Wp, Cp) or None bf16 halo rows (first rows of next tile)
    # wdw_ref:   (K*K, Cp)  f32   BN-folded depthwise weights (tap-major)
    # shift_ref: (1, Cp)    f32   folded depthwise-bias + BN shift
    # wpw_ref:   (Cp, OCp)  bf16  pointwise (1x1) conv weights
    # bpw_ref:   (1, OCp)   f32   pointwise bias
    # o_ref:     (TH, Wo, OCp) bf16  output row tile
    # y_ref:     (TH, Wo, Cp)  bf16  staging buffer (matmul LHS)
    TH, Wo, OCp = o_ref.shape
    Cp = xm_ref.shape[-1]
    K = kernel_size
    s = stride
    main_rows = xm_ref.shape[0]                       # TH * stride

    wdw = wdw_ref[...]                                # (K*K, Cp) loaded once
    w_taps = [wdw[i:i + 1, :] for i in range(K * K)]  # (1, Cp) per tap
    shift = shift_ref[...]                            # (1, Cp)

    # ---- depthwise KxK conv + shift + ReLU6 + bf16 downcast, per row-chunk ----
    # The K*K tap sum is carried in vregs and stored once per chunk; the input
    # band is cast bf16->f32 exactly once per chunk.
    for r0 in range(0, TH, row_chunk):
        rc = min(row_chunk, TH - r0)
        in_lo = r0 * s
        in_hi = (r0 + rc - 1) * s + K                 # exclusive
        if in_hi <= main_rows:
            band = xm_ref[in_lo:in_hi].astype(jnp.float32)
        else:
            # last chunk straddles into the halo rows: concat along the free
            # (non-minor) row axis, still a single cast per element.
            band = jnp.concatenate(
                [xm_ref[in_lo:main_rows].astype(jnp.float32),
                 xh_ref[0:in_hi - main_rows].astype(jnp.float32)], axis=0)

        acc = None
        for kh in range(K):
            for kw in range(K):
                if s == 1:
                    tap = band[kh:kh + rc, kw:kw + Wo, :]
                else:
                    # TODO(synk): stride>1 uses strided value slices; if Mosaic
                    # lowers these slowly, restructure the s>1 path.
                    tap = band[kh:kh + (rc - 1) * s + 1:s,
                               kw:kw + (Wo - 1) * s + 1:s, :]
                contrib = tap * w_taps[kh * K + kw]
                acc = contrib if acc is None else acc + contrib

        y_ref[r0:r0 + rc] = jnp.clip(acc + shift, 0.0, 6.0).astype(jnp.bfloat16)

    # ---- 1x1 pointwise conv: one large-M bf16 MXU matmul over channels ----
    y2 = y_ref[...].reshape(TH * Wo, Cp)              # layout-free (Wo % 8 == 0)
    out = jnp.dot(y2, wpw_ref[...], preferred_element_type=jnp.float32)
    out = out + bpw_ref[...]
    o_ref[...] = out.reshape(TH, Wo, OCp).astype(o_ref.dtype)


def _kernel_halo(xm_ref, xh_ref, wdw_ref, shift_ref, wpw_ref, bpw_ref,
                 o_ref, y_ref, *, kernel_size, stride, row_chunk):
    _sepconv_body(xm_ref, xh_ref, wdw_ref, shift_ref, wpw_ref, bpw_ref,
                  o_ref, y_ref, kernel_size=kernel_size, stride=stride,
                  row_chunk=row_chunk)


def _kernel_nohalo(xm_ref, wdw_ref, shift_ref, wpw_ref, bpw_ref,
                   o_ref, y_ref, *, kernel_size, stride, row_chunk):
    _sepconv_body(xm_ref, None, wdw_ref, shift_ref, wpw_ref, bpw_ref,
                  o_ref, y_ref, kernel_size=kernel_size, stride=stride,
                  row_chunk=row_chunk)


def _pick_tile_h(Ho, Wo_p, Wp_pad, Cp, OCp, stride, K,
                 total_budget=16 * 1024 * 1024):
    """Row-tile height.  Start from >=2 tiles per image but never below the
    M = TH*Wo >= ~512 floor for the pointwise matmul (MXU fill/drain, v6e/v7x),
    then shrink until the SUM of live VMEM buffers (double-buffered blocks +
    scratch) fits a v7x-safe total budget (64 MiB/TC there vs 128 on v5e/v6e)."""
    halo = max(K - stride, 0)
    th = min(Ho, max(_cdiv(512, Wo_p), _cdiv(Ho, 2)))

    def live_bytes(t):
        x_in = t * stride * Wp_pad * Cp * 2           # bf16 input tile
        x_h = halo * Wp_pad * Cp * 2                  # bf16 halo tile
        out = t * Wo_p * OCp * 2                      # bf16 output tile
        w = K * K * Cp * 4 + Cp * 4 + Cp * OCp * 2 + OCp * 4
        y = t * Wo_p * Cp * 2                         # bf16 staging scratch
        return 2 * (x_in + x_h + out + w) + y         # x2: double-buffered blocks

    while th > 1 and live_bytes(th) > total_budget:
        th = _cdiv(th, 2)
    return max(th, 1)


def separable_conv2d(x_nchw, params, *, kernel_size, stride=1, padding=0,
                     eps=1e-5):
    """Forward pass of SeparableConv2d (eval-mode BatchNorm). NCHW in/out."""
    N, C, H, W = x_nchw.shape
    K = kernel_size
    s = stride
    OC = params["pw_weight"].shape[0]
    Hp, Wp = H + 2 * padding, W + 2 * padding
    Ho = (Hp - K) // s + 1
    Wo = (Wp - K) // s + 1
    Cp = _round_up(C, LANES)
    OCp = _round_up(OC, LANES)
    # TODO(synk): thin-channel layers (C, OC << 128, as in this test) waste
    # Cp/C of the lane width; a W-on-lanes / C-on-sublanes packing would recover
    # that factor in HBM traffic and compute but is not implemented here.

    # sublane-align output width -> layout-free reshapes around the matmul
    Wo_p = _round_up(Wo, 8)
    Wp_pad = (Wo_p - 1) * s + K
    HALO = max(K - s, 0)

    # --- fold BatchNorm (eval) + depthwise bias into weights / one shift ---
    scale = params["bn_gamma"] / jnp.sqrt(params["bn_var"] + eps)            # (C,)
    wdw = jnp.transpose(params["dw_weight"].reshape(C, K * K)) * scale       # (K*K,C)
    shift = scale * (params["dw_bias"] - params["bn_mean"]) + params["bn_beta"]

    # --- pad channels to full 128-lane width (padded lanes stay exactly 0) ---
    wdw = jnp.pad(wdw, ((0, 0), (0, Cp - C))).astype(jnp.float32)
    shift = jnp.pad(shift.reshape(1, C), ((0, 0), (0, Cp - C))).astype(jnp.float32)
    wpw = jnp.transpose(params["pw_weight"].reshape(OC, C))                  # (C, OC)
    wpw = jnp.pad(wpw, ((0, Cp - C), (0, OCp - OC))).astype(jnp.bfloat16)
    bpw = jnp.pad(params["pw_bias"].reshape(1, OC),
                  ((0, 0), (0, OCp - OC))).astype(jnp.float32)

    # --- choose row tiling ---
    TH = _pick_tile_h(Ho, Wo_p, Wp_pad, Cp, OCp, s, K)
    NTH = _cdiv(Ho, TH)
    Hp_need = NTH * TH * s + HALO                     # rows the kernel can touch

    # --- layout glue: bf16 cast FIRST, NCHW->NHWC, one combined pad ---
    x = jnp.transpose(x_nchw.astype(jnp.bfloat16), (0, 2, 3, 1))
    x_pad = jnp.pad(
        x, ((0, 0),
            (padding, padding + max(0, Hp_need - Hp)),
            (padding, padding + max(0, Wp_pad - Wp)),
            (0, Cp - C)))
    x_pad = x_pad[:, :, :Wp_pad, :]                   # trim unused columns if any
    # non-overlapping row tiles: a free reshape, no halo duplication in HBM
    x_main = x_pad[:, :NTH * TH * s].reshape(N, NTH, TH * s, Wp_pad, Cp)

    row_chunk = max(1, min(TH, max(1, 64 // max(Wo_p, 1))))
    kw_args = dict(kernel_size=K, stride=s, row_chunk=row_chunk)

    in_specs = [
        pl.BlockSpec((None, None, TH * s, Wp_pad, Cp),
                     lambda n, t: (n, t, 0, 0, 0)),
    ]
    operands = [x_main]
    if HALO > 0:
        # tiny gather: first HALO rows of each next tile's region
        starts = (jnp.arange(NTH) + 1) * TH * s
        idx = starts[:, None] + jnp.arange(HALO)[None, :]
        x_halo = x_pad[:, idx]                        # (N, NTH, HALO, Wp_pad, Cp)
        in_specs.append(pl.BlockSpec((None, None, HALO, Wp_pad, Cp),
                                     lambda n, t: (n, t, 0, 0, 0)))
        operands.append(x_halo)
        kern = functools.partial(_kernel_halo, **kw_args)
    else:
        kern = functools.partial(_kernel_nohalo, **kw_args)

    in_specs += [
        pl.BlockSpec((K * K, Cp), lambda n, t: (0, 0)),
        pl.BlockSpec((1, Cp), lambda n, t: (0, 0)),
        pl.BlockSpec((Cp, OCp), lambda n, t: (0, 0)),
        pl.BlockSpec((1, OCp), lambda n, t: (0, 0)),
    ]
    operands += [wdw, shift, wpw, bpw]

    # sum of live (double-buffered) VMEM -> scoped limit (kept under v7x's 64 MiB)
    vmem_need = (2 * (TH * s * Wp_pad * Cp * 2 + HALO * Wp_pad * Cp * 2
                      + TH * Wo_p * OCp * 2
                      + K * K * Cp * 4 + Cp * 4 + Cp * OCp * 2 + OCp * 4)
                 + TH * Wo_p * Cp * 2)
    vmem_limit = int(min(max(2 * vmem_need + (8 << 20), 32 << 20), 48 << 20))

    out_nhwc = pl.pallas_call(
        kern,
        out_shape=jax.ShapeDtypeStruct((N, NTH * TH, Wo_p, OCp), jnp.bfloat16),
        grid=(N, NTH),
        in_specs=in_specs,
        out_specs=pl.BlockSpec((None, TH, Wo_p, OCp), lambda n, t: (n, t, 0, 0)),
        scratch_shapes=[pltpu.VMEM((TH, Wo_p, Cp), jnp.bfloat16)],
        compiler_params=pltpu.CompilerParams(
            dimension_semantics=("parallel", "parallel"),
            vmem_limit_bytes=vmem_limit),
    )(*operands)

    # slice padded rows/cols/channels away, back to NCHW, f32 like the module
    out = out_nhwc[:, :Ho, :Wo, :OC]
    return jnp.transpose(out, (0, 3, 1, 2)).astype(jnp.float32)


def _reference(x, p, K, stride, padding, eps=1e-5):
    """Pure-JAX NCHW reference (eval-mode BatchNorm), for verification."""
    hi = jax.lax.Precision.HIGHEST
    dw = jax.lax.conv_general_dilated(
        x, p["dw_weight"], window_strides=(stride, stride),
        padding=((padding, padding), (padding, padding)),
        feature_group_count=x.shape[1],
        dimension_numbers=("NCHW", "OIHW", "NCHW"), precision=hi)
    dw = dw + p["dw_bias"][None, :, None, None]
    scale = p["bn_gamma"] / jnp.sqrt(p["bn_var"] + eps)
    shift = p["bn_beta"] - p["bn_mean"] * scale
    y = dw * scale[None, :, None, None] + shift[None, :, None, None]
    y = jnp.clip(y, 0.0, 6.0)
    out = jax.lax.conv_general_dilated(
        y, p["pw_weight"], window_strides=(1, 1), padding="VALID",
        dimension_numbers=("NCHW", "OIHW", "NCHW"), precision=hi)
    return out + p["pw_bias"][None, :, None, None]


if __name__ == "__main__":
    # small shapes consistent with the module
    N, C, H, W = 2, 4, 16, 16
    OC, K, stride, padding = 8, 3, 1, 1

    key = jax.random.PRNGKey(0)
    ks = jax.random.split(key, 7)
    x = jax.random.normal(ks[0], (N, C, H, W), jnp.float32)

    # deterministic synthetic parameters (shapes follow nn.Conv2d / nn.BatchNorm2d)
    params = dict(
        dw_weight=0.1 * jax.random.normal(ks[1], (C, 1, K, K), jnp.float32),
        dw_bias=0.05 * jax.random.normal(ks[2], (C,), jnp.float32),
        bn_gamma=1.0 + 0.1 * jax.random.normal(ks[3], (C,), jnp.float32),
        bn_beta=0.1 * jax.random.normal(ks[4], (C,), jnp.float32),
        bn_mean=jnp.zeros((C,), jnp.float32),   # fresh-module running stats
        bn_var=jnp.ones((C,), jnp.float32),
        pw_weight=0.1 * jax.random.normal(ks[5], (OC, C, 1, 1), jnp.float32),
        pw_bias=0.05 * jax.random.normal(ks[6], (OC,), jnp.float32),
    )
    # TODO(synk): training-mode BatchNorm (batch statistics) not implemented;
    # kernel reproduces the module's inference (.eval()) forward with running stats.

    out = separable_conv2d(x, params, kernel_size=K, stride=stride, padding=padding)
    out = jax.block_until_ready(out)

    ref = _reference(x, params, K, stride, padding)
    assert out.shape == (N, OC, H, W), out.shape
    err = float(jnp.max(jnp.abs(out - ref)))
    assert err < 5e-2, f"max abs error too large: {err}"
    print("KERNEL_OK")
</pallas_src>

<mosaic_0001>
module attributes {stable_mosaic.version = 11 : i64} {
  func.func @_kernel_halo(%arg0: i32, %arg1: i32, %arg2: memref<1x1x16x18x128xbf16, #tpu.memory_space<vmem>>, %arg3: memref<1x1x2x18x128xbf16, #tpu.memory_space<vmem>>, %arg4: memref<9x128xf32, #tpu.memory_space<vmem>>, %arg5: memref<1x128xf32, #tpu.memory_space<vmem>>, %arg6: memref<128x128xbf16, #tpu.memory_space<vmem>>, %arg7: memref<1x128xf32, #tpu.memory_space<vmem>>, %arg8: memref<1x16x16x128xbf16, #tpu.memory_space<vmem>>, %arg9: memref<16x16x128xbf16, #tpu.memory_space<vmem>>) attributes {dimension_semantics = [#tpu.dimension_semantics<parallel>, #tpu.dimension_semantics<parallel>], iteration_bounds = array<i64: 2, 1>, scalar_prefetch = 0 : i64, scratch_operands = 1 : i64, tpu.core_type = #tpu.core_type<tc>, window_params = [{transform_indices = @transform_0, window_bounds = array<i64: 1, 1, 16, 18, 128>}, {transform_indices = @transform_1, window_bounds = array<i64: 1, 1, 2, 18, 128>}, {pipeline_mode = #tpu.pipeline_mode<synchronous>, transform_indices = @transform_2, window_bounds = array<i64: 9, 128>}, {pipeline_mode = #tpu.pipeline_mode<synchronous>, transform_indices = @transform_3, window_bounds = array<i64: 1, 128>}, {pipeline_mode = #tpu.pipeline_mode<synchronous>, transform_indices = @transform_4, window_bounds = array<i64: 128, 128>}, {pipeline_mode = #tpu.pipeline_mode<synchronous>, transform_indices = @transform_5, window_bounds = array<i64: 1, 128>}, {transform_indices = @transform_6, window_bounds = array<i64: 1, 16, 16, 128>}]} {
    %c0 = arith.constant 0 : index
    %c0_0 = arith.constant 0 : index
    %0 = vector.load %arg4[%c0, %c0_0] : memref<9x128xf32, #tpu.memory_space<vmem>>, vector<9x128xf32>
    %1 = vector.extract_strided_slice %0 {offsets = [0, 0], sizes = [1, 128], strides = [1, 1]} : vector<9x128xf32> to vector<1x128xf32>
    %2 = vector.extract_strided_slice %0 {offsets = [1, 0], sizes = [1, 128], strides = [1, 1]} : vector<9x128xf32> to vector<1x128xf32>
    %3 = vector.extract_strided_slice %0 {offsets = [2, 0], sizes = [1, 128], strides = [1, 1]} : vector<9x128xf32> to vector<1x128xf32>
    %4 = vector.extract_strided_slice %0 {offsets = [3, 0], sizes = [1, 128], strides = [1, 1]} : vector<9x128xf32> to vector<1x128xf32>
    %5 = vector.extract_strided_slice %0 {offsets = [4, 0], sizes = [1, 128], strides = [1, 1]} : vector<9x128xf32> to vector<1x128xf32>
    %6 = vector.extract_strided_slice %0 {offsets = [5, 0], sizes = [1, 128], strides = [1, 1]} : vector<9x128xf32> to vector<1x128xf32>
    %7 = vector.extract_strided_slice %0 {offsets = [6, 0], sizes = [1, 128], strides = [1, 1]} : vector<9x128xf32> to vector<1x128xf32>
    %8 = vector.extract_strided_slice %0 {offsets = [7, 0], sizes = [1, 128], strides = [1, 1]} : vector<9x128xf32> to vector<1x128xf32>
    %9 = vector.extract_strided_slice %0 {offsets = [8, 0], sizes = [1, 128], strides = [1, 1]} : vector<9x128xf32> to vector<1x128xf32>
    %c0_1 = arith.constant 0 : index
    %c0_2 = arith.constant 0 : index
    %10 = vector.load %arg5[%c0_1, %c0_2] : memref<1x128xf32, #tpu.memory_space<vmem>>, vector<1x128xf32>
    %c0_3 = arith.constant 0 : index
    %c0_4 = arith.constant 0 : index
    %c0_5 = arith.constant 0 : index
    %c0_6 = arith.constant 0 : index
    %c0_7 = arith.constant 0 : index
    %11 = vector.load %arg2[%c0_3, %c0_4, %c0_5, %c0_6, %c0_7] : memref<1x1x16x18x128xbf16, #tpu.memory_space<vmem>>, vector<1x1x6x18x128xbf16>
    %12 = vector.shape_cast %11 : vector<1x1x6x18x128xbf16> to vector<6x18x128xbf16>
    %13 = arith.extf %12 : vector<6x18x128xbf16> to vector<6x18x128xf32>
    %14 = vector.extract_strided_slice %13 {offsets = [0, 0, 0], sizes = [4, 16, 128], strides = [1, 1, 1]} : vector<6x18x128xf32> to vector<4x16x128xf32>
    %15 = vector.shape_cast %1 : vector<1x128xf32> to vector<1x1x128xf32>
    %16 = vector.broadcast %15 : vector<1x1x128xf32> to vector<4x16x128xf32>
    %17 = arith.mulf %14, %16 : vector<4x16x128xf32>
    %18 = vector.extract_strided_slice %13 {offsets = [0, 1, 0], sizes = [4, 16, 128], strides = [1, 1, 1]} : vector<6x18x128xf32> to vector<4x16x128xf32>
    %19 = vector.shape_cast %2 : vector<1x128xf32> to vector<1x1x128xf32>
    %20 = vector.broadcast %19 : vector<1x1x128xf32> to vector<4x16x128xf32>
    %21 = arith.mulf %18, %20 : vector<4x16x128xf32>
    %22 = arith.addf %17, %21 : vector<4x16x128xf32>
    %23 = vector.extract_strided_slice %13 {offsets = [0, 2, 0], sizes = [4, 16, 128], strides = [1, 1, 1]} : vector<6x18x128xf32> to vector<4x16x128xf32>
    %24 = vector.shape_cast %3 : vector<1x128xf32> to vector<1x1x128xf32>
    %25 = vector.broadcast %24 : vector<1x1x128xf32> to vector<4x16x128xf32>
    %26 = arith.mulf %23, %25 : vector<4x16x128xf32>
    %27 = arith.addf %22, %26 : vector<4x16x128xf32>
    %28 = vector.extract_strided_slice %13 {offsets = [1, 0, 0], sizes = [4, 16, 128], strides = [1, 1, 1]} : vector<6x18x128xf32> to vector<4x16x128xf32>
    %29 = vector.shape_cast %4 : vector<1x128xf32> to vector<1x1x128xf32>
    %30 = vector.broadcast %29 : vector<1x1x128xf32> to vector<4x16x128xf32>
    %31 = arith.mulf %28, %30 : vector<4x16x128xf32>
    %32 = arith.addf %27, %31 : vector<4x16x128xf32>
    %33 = vector.extract_strided_slice %13 {offsets = [1, 1, 0], sizes = [4, 16, 128], strides = [1, 1, 1]} : vector<6x18x128xf32> to vector<4x16x128xf32>
    %34 = vector.shape_cast %5 : vector<1x128xf32> to vector<1x1x128xf32>
    %35 = vector.broadcast %34 : vector<1x1x128xf32> to vector<4x16x128xf32>
    %36 = arith.mulf %33, %35 : vector<4x16x128xf32>
    %37 = arith.addf %32, %36 : vector<4x16x128xf32>
    %38 = vector.extract_strided_slice %13 {offsets = [1, 2, 0], sizes = [4, 16, 128], strides = [1, 1, 1]} : vector<6x18x128xf32> to vector<4x16x128xf32>
    %39 = vector.shape_cast %6 : vector<1x128xf32> to vector<1x1x128xf32>
    %40 = vector.broadcast %39 : vector<1x1x128xf32> to vector<4x16x128xf32>
    %41 = arith.mulf %38, %40 : vector<4x16x128xf32>
    %42 = arith.addf %37, %41 : vector<4x16x128xf32>
    %43 = vector.extract_strided_slice %13 {offsets = [2, 0, 0], sizes = [4, 16, 128], strides = [1, 1, 1]} : vector<6x18x128xf32> to vector<4x16x128xf32>
    %44 = vector.shape_cast %7 : vector<1x128xf32> to vector<1x1x128xf32>
    %45 = vector.broadcast %44 : vector<1x1x128xf32> to vector<4x16x128xf32>
    %46 = arith.mulf %43, %45 : vector<4x16x128xf32>
    %47 = arith.addf %42, %46 : vector<4x16x128xf32>
    %48 = vector.extract_strided_slice %13 {offsets = [2, 1, 0], sizes = [4, 16, 128], strides = [1, 1, 1]} : vector<6x18x128xf32> to vector<4x16x128xf32>
    %49 = vector.shape_cast %8 : vector<1x128xf32> to vector<1x1x128xf32>
    %50 = vector.broadcast %49 : vector<1x1x128xf32> to vector<4x16x128xf32>
    %51 = arith.mulf %48, %50 : vector<4x16x128xf32>
    %52 = arith.addf %47, %51 : vector<4x16x128xf32>
    %53 = vector.extract_strided_slice %13 {offsets = [2, 2, 0], sizes = [4, 16, 128], strides = [1, 1, 1]} : vector<6x18x128xf32> to vector<4x16x128xf32>
    %54 = vector.shape_cast %9 : vector<1x128xf32> to vector<1x1x128xf32>
    %55 = vector.broadcast %54 : vector<1x1x128xf32> to vector<4x16x128xf32>
    %56 = arith.mulf %53, %55 : vector<4x16x128xf32>
    %57 = arith.addf %52, %56 : vector<4x16x128xf32>
    %58 = vector.shape_cast %10 : vector<1x128xf32> to vector<1x1x128xf32>
    %59 = vector.broadcast %58 : vector<1x1x128xf32> to vector<4x16x128xf32>
    %60 = arith.addf %57, %59 : vector<4x16x128xf32>
    %cst = arith.constant 0.000000e+00 : f32
    %cst_8 = arith.constant 6.000000e+00 : f32
    %61 = vector.broadcast %cst : f32 to vector<4x16x128xf32>
    %62 = arith.maximumf %61, %60 : vector<4x16x128xf32>
    %63 = vector.broadcast %cst_8 : f32 to vector<4x16x128xf32>
    %64 = arith.minimumf %63, %62 : vector<4x16x128xf32>
    %65 = arith.truncf %64 : vector<4x16x128xf32> to vector<4x16x128xbf16>
    %c0_9 = arith.constant 0 : index
    %c0_10 = arith.constant 0 : index
    %c0_11 = arith.constant 0 : index
    %66 = vector.load %arg9[%c0_9, %c0_10, %c0_11] : memref<16x16x128xbf16, #tpu.memory_space<vmem>>, vector<4x16x128xbf16>
    tpu.vector_store %arg9[%c0_9, %c0_10, %c0_11], %65 {strides = array<i32>} : memref<16x16x128xbf16, #tpu.memory_space<vmem>>, vector<4x16x128xbf16>,
    %c0_12 = arith.constant 0 : index
    %c0_13 = arith.constant 0 : index
    %c4 = arith.constant 4 : index
    %c0_14 = arith.constant 0 : index
    %c0_15 = arith.constant 0 : index
    %67 = vector.load %arg2[%c0_12, %c0_13, %c4, %c0_14, %c0_15] : memref<1x1x16x18x128xbf16, #tpu.memory_space<vmem>>, vector<1x1x6x18x128xbf16>
    %68 = vector.shape_cast %67 : vector<1x1x6x18x128xbf16> to vector<6x18x128xbf16>
    %69 = arith.extf %68 : vector<6x18x128xbf16> to vector<6x18x128xf32>
    %70 = vector.extract_strided_slice %69 {offsets = [0, 0, 0], sizes = [4, 16, 128], strides = [1, 1, 1]} : vector<6x18x128xf32> to vector<4x16x128xf32>
    %71 = vector.shape_cast %1 : vector<1x128xf32> to vector<1x1x128xf32>
    %72 = vector.broadcast %71 : vector<1x1x128xf32> to vector<4x16x128xf32>
    %73 = arith.mulf %70, %72 : vector<4x16x128xf32>
    %74 = vector.extract_strided_slice %69 {offsets = [0, 1, 0], sizes = [4, 16, 128], strides = [1, 1, 1]} : vector<6x18x128xf32> to vector<4x16x128xf32>
    %75 = vector.shape_cast %2 : vector<1x128xf32> to vector<1x1x128xf32>
    %76 = vector.broadcast %75 : vector<1x1x128xf32> to vector<4x16x128xf32>
    %77 = arith.mulf %74, %76 : vector<4x16x128xf32>
    %78 = arith.addf %73, %77 : vector<4x16x128xf32>
    %79 = vector.extract_strided_slice %69 {offsets = [0, 2, 0], sizes = [4, 16, 128], strides = [1, 1, 1]} : vector<6x18x128xf32> to vector<4x16x128xf32>
    %80 = vector.shape_cast %3 : vector<1x128xf32> to vector<1x1x128xf32>
    %81 = vector.broadcast %80 : vector<1x1x128xf32> to vector<4x16x128xf32>
    %82 = arith.mulf %79, %81 : vector<4x16x128xf32>
    %83 = arith.addf %78, %82 : vector<4x16x128xf32>
    %84 = vector.extract_strided_slice %69 {offsets = [1, 0, 0], sizes = [4, 16, 128], strides = [1, 1, 1]} : vector<6x18x128xf32> to vector<4x16x128xf32>
    %85 = vector.shape_cast %4 : vector<1x128xf32> to vector<1x1x128xf32>
    %86 = vector.broadcast %85 : vector<1x1x128xf32> to vector<4x16x128xf32>
    %87 = arith.mulf %84, %86 : vector<4x16x128xf32>
    %88 = arith.addf %83, %87 : vector<4x16x128xf32>
    %89 = vector.extract_strided_slice %69 {offsets = [1, 1, 0], sizes = [4, 16, 128], strides = [1, 1, 1]} : vector<6x18x128xf32> to vector<4x16x128xf32>
    %90 = vector.shape_cast %5 : vector<1x128xf32> to vector<1x1x128xf32>
    %91 = vector.broadcast %90 : vector<1x1x128xf32> to vector<4x16x128xf32>
    %92 = arith.mulf %89, %91 : vector<4x16x128xf32>
    %93 = arith.addf %88, %92 : vector<4x16x128xf32>
    %94 = vector.extract_strided_slice %69 {offsets = [1, 2, 0], sizes = [4, 16, 128], strides = [1, 1, 1]} : vector<6x18x128xf32> to vector<4x16x128xf32>
    %95 = vector.shape_cast %6 : vector<1x128xf32> to vector<1x1x128xf32>
    %96 = vector.broadcast %95 : vector<1x1x128xf32> to vector<4x16x128xf32>
    %97 = arith.mulf %94, %96 : vector<4x16x128xf32>
    %98 = arith.addf %93, %97 : vector<4x16x128xf32>
    %99 = vector.extract_strided_slice %69 {offsets = [2, 0, 0], sizes = [4, 16, 128], strides = [1, 1, 1]} : vector<6x18x128xf32> to vector<4x16x128xf32>
    %100 = vector.shape_cast %7 : vector<1x128xf32> to vector<1x1x128xf32>
    %101 = vector.broadcast %100 : vector<1x1x128xf32> to vector<4x16x128xf32>
    %102 = arith.mulf %99, %101 : vector<4x16x128xf32>
    %103 = arith.addf %98, %102 : vector<4x16x128xf32>
    %104 = vector.extract_strided_slice %69 {offsets = [2, 1, 0], sizes = [4, 16, 128], strides = [1, 1, 1]} : vector<6x18x128xf32> to vector<4x16x128xf32>
    %105 = vector.shape_cast %8 : vector<1x128xf32> to vector<1x1x128xf32>
    %106 = vector.broadcast %105 : vector<1x1x128xf32> to vector<4x16x128xf32>
    %107 = arith.mulf %104, %106 : vector<4x16x128xf32>
    %108 = arith.addf %103, %107 : vector<4x16x128xf32>
    %109 = vector.extract_strided_slice %69 {offsets = [2, 2, 0], sizes = [4, 16, 128], strides = [1, 1, 1]} : vector<6x18x128xf32> to vector<4x16x128xf32>
    %110 = vector.shape_cast %9 : vector<1x128xf32> to vector<1x1x128xf32>
    %111 = vector.broadcast %110 : vector<1x1x128xf32> to vector<4x16x128xf32>
    %112 = arith.mulf %109, %111 : vector<4x16x128xf32>
    %113 = arith.addf %108, %112 : vector<4x16x128xf32>
    %114 = vector.shape_cast %10 : vector<1x128xf32> to vector<1x1x128xf32>
    %115 = vector.broadcast %114 : vector<1x1x128xf32> to vector<4x16x128xf32>
    %116 = arith.addf %113, %115 : vector<4x16x128xf32>
    %cst_16 = arith.constant 0.000000e+00 : f32
    %cst_17 = arith.constant 6.000000e+00 : f32
    %117 = vector.broadcast %cst_16 : f32 to vector<4x16x128xf32>
    %118 = arith.maximumf %117, %116 : vector<4x16x128xf32>
    %119 = vector.broadcast %cst_17 : f32 to vector<4x16x128xf32>
    %120 = arith.minimumf %119, %118 : vector<4x16x128xf32>
    %121 = arith.truncf %120 : vector<4x16x128xf32> to vector<4x16x128xbf16>
    %c4_18 = arith.constant 4 : index
    %c0_19 = arith.constant 0 : index
    %c0_20 = arith.constant 0 : index
    %122 = vector.load %arg9[%c4_18, %c0_19, %c0_20] : memref<16x16x128xbf16, #tpu.memory_space<vmem>>, vector<4x16x128xbf16>
    tpu.vector_store %arg9[%c4_18, %c0_19, %c0_20], %121 {strides = array<i32>} : memref<16x16x128xbf16, #tpu.memory_space<vmem>>, vector<4x16x128xbf16>,
    %c0_21 = arith.constant 0 : index
    %c0_22 = arith.constant 0 : index
    %c8 = arith.constant 8 : index
    %c0_23 = arith.constant 0 : index
    %c0_24 = arith.constant 0 : index
    %123 = vector.load %arg2[%c0_21, %c0_22, %c8, %c0_23, %c0_24] : memref<1x1x16x18x128xbf16, #tpu.memory_space<vmem>>, vector<1x1x6x18x128xbf16>
    %124 = vector.shape_cast %123 : vector<1x1x6x18x128xbf16> to vector<6x18x128xbf16>
    %125 = arith.extf %124 : vector<6x18x128xbf16> to vector<6x18x128xf32>
    %126 = vector.extract_strided_slice %125 {offsets = [0, 0, 0], sizes = [4, 16, 128], strides = [1, 1, 1]} : vector<6x18x128xf32> to vector<4x16x128xf32>
    %127 = vector.shape_cast %1 : vector<1x128xf32> to vector<1x1x128xf32>
    %128 = vector.broadcast %127 : vector<1x1x128xf32> to vector<4x16x128xf32>
    %129 = arith.mulf %126, %128 : vector<4x16x128xf32>
    %130 = vector.extract_strided_slice %125 {offsets = [0, 1, 0], sizes = [4, 16, 128], strides = [1, 1, 1]} : vector<6x18x128xf32> to vector<4x16x128xf32>
    %131 = vector.shape_cast %2 : vector<1x128xf32> to vector<1x1x128xf32>
    %132 = vector.broadcast %131 : vector<1x1x128xf32> to vector<4x16x128xf32>
    %133 = arith.mulf %130, %132 : vector<4x16x128xf32>
    %134 = arith.addf %129, %133 : vector<4x16x128xf32>
    %135 = vector.extract_strided_slice %125 {offsets = [0, 2, 0], sizes = [4, 16, 128], strides = [1, 1, 1]} : vector<6x18x128xf32> to vector<4x16x128xf32>
    %136 = vector.shape_cast %3 : vector<1x128xf32> to vector<1x1x128xf32>
    %137 = vector.broadcast %136 : vector<1x1x128xf32> to vector<4x16x128xf32>
    %138 = arith.mulf %135, %137 : vector<4x16x128xf32>
    %139 = arith.addf %134, %138 : vector<4x16x128xf32>
    %140 = vector.extract_strided_slice %125 {offsets = [1, 0, 0], sizes = [4, 16, 128], strides = [1, 1, 1]} : vector<6x18x128xf32> to vector<4x16x128xf32>
    %141 = vector.shape_cast %4 : vector<1x128xf32> to vector<1x1x128xf32>
    %142 = vector.broadcast %141 : vector<1x1x128xf32> to vector<4x16x128xf32>
    %143 = arith.mulf %140, %142 : vector<4x16x128xf32>
    %144 = arith.addf %139, %143 : vector<4x16x128xf32>
    %145 = vector.extract_strided_slice %125 {offsets = [1, 1, 0], sizes = [4, 16, 128], strides = [1, 1, 1]} : vector<6x18x128xf32> to vector<4x16x128xf32>
    %146 = vector.shape_cast %5 : vector<1x128xf32> to vector<1x1x128xf32>
    %147 = vector.broadcast %146 : vector<1x1x128xf32> to vector<4x16x128xf32>
    %148 = arith.mulf %145, %147 : vector<4x16x128xf32>
    %149 = arith.addf %144, %148 : vector<4x16x128xf32>
    %150 = vector.extract_strided_slice %125 {offsets = [1, 2, 0], sizes = [4, 16, 128], strides = [1, 1, 1]} : vector<6x18x128xf32> to vector<4x16x128xf32>
    %151 = vector.shape_cast %6 : vector<1x128xf32> to vector<1x1x128xf32>
    %152 = vector.broadcast %151 : vector<1x1x128xf32> to vector<4x16x128xf32>
    %153 = arith.mulf %150, %152 : vector<4x16x128xf32>
    %154 = arith.addf %149, %153 : vector<4x16x128xf32>
    %155 = vector.extract_strided_slice %125 {offsets = [2, 0, 0], sizes = [4, 16, 128], strides = [1, 1, 1]} : vector<6x18x128xf32> to vector<4x16x128xf32>
    %156 = vector.shape_cast %7 : vector<1x128xf32> to vector<1x1x128xf32>
    %157 = vector.broadcast %156 : vector<1x1x128xf32> to vector<4x16x128xf32>
    %158 = arith.mulf %155, %157 : vector<4x16x128xf32>
    %159 = arith.addf %154, %158 : vector<4x16x128xf32>
    %160 = vector.extract_strided_slice %125 {offsets = [2, 1, 0], sizes = [4, 16, 128], strides = [1, 1, 1]} : vector<6x18x128xf32> to vector<4x16x128xf32>
    %161 = vector.shape_cast %8 : vector<1x128xf32> to vector<1x1x128xf32>
    %162 = vector.broadcast %161 : vector<1x1x128xf32> to vector<4x16x128xf32>
    %163 = arith.mulf %160, %162 : vector<4x16x128xf32>
    %164 = arith.addf %159, %163 : vector<4x16x128xf32>
    %165 = vector.extract_strided_slice %125 {offsets = [2, 2, 0], sizes = [4, 16, 128], strides = [1, 1, 1]} : vector<6x18x128xf32> to vector<4x16x128xf32>
    %166 = vector.shape_cast %9 : vector<1x128xf32> to vector<1x1x128xf32>
    %167 = vector.broadcast %166 : vector<1x1x128xf32> to vector<4x16x128xf32>
    %168 = arith.mulf %165, %167 : vector<4x16x128xf32>
    %169 = arith.addf %164, %168 : vector<4x16x128xf32>
    %170 = vector.shape_cast %10 : vector<1x128xf32> to vector<1x1x128xf32>
    %171 = vector.broadcast %170 : vector<1x1x128xf32> to vector<4x16x128xf32>
    %172 = arith.addf %169, %171 : vector<4x16x128xf32>
    %cst_25 = arith.constant 0.000000e+00 : f32
    %cst_26 = arith.constant 6.000000e+00 : f32
    %173 = vector.broadcast %cst_25 : f32 to vector<4x16x128xf32>
    %174 = arith.maximumf %173, %172 : vector<4x16x128xf32>
    %175 = vector.broadcast %cst_26 : f32 to vector<4x16x128xf32>
    %176 = arith.minimumf %175, %174 : vector<4x16x128xf32>
    %177 = arith.truncf %176 : vector<4x16x128xf32> to vector<4x16x128xbf16>
    %c8_27 = arith.constant 8 : index
    %c0_28 = arith.constant 0 : index
    %c0_29 = arith.constant 0 : index
    %178 = vector.load %arg9[%c8_27, %c0_28, %c0_29] : memref<16x16x128xbf16, #tpu.memory_space<vmem>>, vector<4x16x128xbf16>
    tpu.vector_store %arg9[%c8_27, %c0_28, %c0_29], %177 {strides = array<i32>} : memref<16x16x128xbf16, #tpu.memory_space<vmem>>, vector<4x16x128xbf16>,
    %c0_30 = arith.constant 0 : index
    %c0_31 = arith.constant 0 : index
    %c12 = arith.constant 12 : index
    %c0_32 = arith.constant 0 : index
    %c0_33 = arith.constant 0 : index
    %179 = vector.load %arg2[%c0_30, %c0_31, %c12, %c0_32, %c0_33] : memref<1x1x16x18x128xbf16, #tpu.memory_space<vmem>>, vector<1x1x4x18x128xbf16>
    %180 = vector.shape_cast %179 : vector<1x1x4x18x128xbf16> to vector<4x18x128xbf16>
    %181 = arith.extf %180 : vector<4x18x128xbf16> to vector<4x18x128xf32>
    %c0_34 = arith.constant 0 : index
    %c0_35 = arith.constant 0 : index
    %c0_36 = arith.constant 0 : index
    %c0_37 = arith.constant 0 : index
    %c0_38 = arith.constant 0 : index
    %182 = vector.load %arg3[%c0_34, %c0_35, %c0_36, %c0_37, %c0_38] : memref<1x1x2x18x128xbf16, #tpu.memory_space<vmem>>, vector<1x1x2x18x128xbf16>
    %183 = vector.shape_cast %182 : vector<1x1x2x18x128xbf16> to vector<2x18x128xbf16>
    %184 = arith.extf %183 : vector<2x18x128xbf16> to vector<2x18x128xf32>
    %185 = tpu.concatenate %181, %184 in 0 : vector<4x18x128xf32>, vector<2x18x128xf32> -> vector<6x18x128xf32>
    %186 = vector.extract_strided_slice %185 {offsets = [0, 0, 0], sizes = [4, 16, 128], strides = [1, 1, 1]} : vector<6x18x128xf32> to vector<4x16x128xf32>
    %187 = vector.shape_cast %1 : vector<1x128xf32> to vector<1x1x128xf32>
    %188 = vector.broadcast %187 : vector<1x1x128xf32> to vector<4x16x128xf32>
    %189 = arith.mulf %186, %188 : vector<4x16x128xf32>
    %190 = vector.extract_strided_slice %185 {offsets = [0, 1, 0], sizes = [4, 16, 128], strides = [1, 1, 1]} : vector<6x18x128xf32> to vector<4x16x128xf32>
    %191 = vector.shape_cast %2 : vector<1x128xf32> to vector<1x1x128xf32>
    %192 = vector.broadcast %191 : vector<1x1x128xf32> to vector<4x16x128xf32>
    %193 = arith.mulf %190, %192 : vector<4x16x128xf32>
    %194 = arith.addf %189, %193 : vector<4x16x128xf32>
    %195 = vector.extract_strided_slice %185 {offsets = [0, 2, 0], sizes = [4, 16, 128], strides = [1, 1, 1]} : vector<6x18x128xf32> to vector<4x16x128xf32>
    %196 = vector.shape_cast %3 : vector<1x128xf32> to vector<1x1x128xf32>
    %197 = vector.broadcast %196 : vector<1x1x128xf32> to vector<4x16x128xf32>
    %198 = arith.mulf %195, %197 : vector<4x16x128xf32>
    %199 = arith.addf %194, %198 : vector<4x16x128xf32>
    %200 = vector.extract_strided_slice %185 {offsets = [1, 0, 0], sizes = [4, 16, 128], strides = [1, 1, 1]} : vector<6x18x128xf32> to vector<4x16x128xf32>
    %201 = vector.shape_cast %4 : vector<1x128xf32> to vector<1x1x128xf32>
    %202 = vector.broadcast %201 : vector<1x1x128xf32> to vector<4x16x128xf32>
    %203 = arith.mulf %200, %202 : vector<4x16x128xf32>
    %204 = arith.addf %199, %203 : vector<4x16x128xf32>
    %205 = vector.extract_strided_slice %185 {offsets = [1, 1, 0], sizes = [4, 16, 128], strides = [1, 1, 1]} : vector<6x18x128xf32> to vector<4x16x128xf32>
    %206 = vector.shape_cast %5 : vector<1x128xf32> to vector<1x1x128xf32>
    %207 = vector.broadcast %206 : vector<1x1x128xf32> to vector<4x16x128xf32>
    %208 = arith.mulf %205, %207 : vector<4x16x128xf32>
    %209 = arith.addf %204, %208 : vector<4x16x128xf32>
    %210 = vector.extract_strided_slice %185 {offsets = [1, 2, 0], sizes = [4, 16, 128], strides = [1, 1, 1]} : vector<6x18x128xf32> to vector<4x16x128xf32>
    %211 = vector.shape_cast %6 : vector<1x128xf32> to vector<1x1x128xf32>
    %212 = vector.broadcast %211 : vector<1x1x128xf32> to vector<4x16x128xf32>
    %213 = arith.mulf %210, %212 : vector<4x16x128xf32>
    %214 = arith.addf %209, %213 : vector<4x16x128xf32>
    %215 = vector.extract_strided_slice %185 {offsets = [2, 0, 0], sizes = [4, 16, 128], strides = [1, 1, 1]} : vector<6x18x128xf32> to vector<4x16x128xf32>
    %216 = vector.shape_cast %7 : vector<1x128xf32> to vector<1x1x128xf32>
    %217 = vector.broadcast %216 : vector<1x1x128xf32> to vector<4x16x128xf32>
    %218 = arith.mulf %215, %217 : vector<4x16x128xf32>
    %219 = arith.addf %214, %218 : vector<4x16x128xf32>
    %220 = vector.extract_strided_slice %185 {offsets = [2, 1, 0], sizes = [4, 16, 128], strides = [1, 1, 1]} : vector<6x18x128xf32> to vector<4x16x128xf32>
    %221 = vector.shape_cast %8 : vector<1x128xf32> to vector<1x1x128xf32>
    %222 = vector.broadcast %221 : vector<1x1x128xf32> to vector<4x16x128xf32>
    %223 = arith.mulf %220, %222 : vector<4x16x128xf32>
    %224 = arith.addf %219, %223 : vector<4x16x128xf32>
    %225 = vector.extract_strided_slice %185 {offsets = [2, 2, 0], sizes = [4, 16, 128], strides = [1, 1, 1]} : vector<6x18x128xf32> to vector<4x16x128xf32>
    %226 = vector.shape_cast %9 : vector<1x128xf32> to vector<1x1x128xf32>
    %227 = vector.broadcast %226 : vector<1x1x128xf32> to vector<4x16x128xf32>
    %228 = arith.mulf %225, %227 : vector<4x16x128xf32>
    %229 = arith.addf %224, %228 : vector<4x16x128xf32>
    %230 = vector.shape_cast %10 : vector<1x128xf32> to vector<1x1x128xf32>
    %231 = vector.broadcast %230 : vector<1x1x128xf32> to vector<4x16x128xf32>
    %232 = arith.addf %229, %231 : vector<4x16x128xf32>
    %cst_39 = arith.constant 0.000000e+00 : f32
    %cst_40 = arith.constant 6.000000e+00 : f32
    %233 = vector.broadcast %cst_39 : f32 to vector<4x16x128xf32>
    %234 = arith.maximumf %233, %232 : vector<4x16x128xf32>
    %235 = vector.broadcast %cst_40 : f32 to vector<4x16x128xf32>
    %236 = arith.minimumf %235, %234 : vector<4x16x128xf32>
    %237 = arith.truncf %236 : vector<4x16x128xf32> to vector<4x16x128xbf16>
    %c12_41 = arith.constant 12 : index
    %c0_42 = arith.constant 0 : index
    %c0_43 = arith.constant 0 : index
    %238 = vector.load %arg9[%c12_41, %c0_42, %c0_43] : memref<16x16x128xbf16, #tpu.memory_space<vmem>>, vector<4x16x128xbf16>
    tpu.vector_store %arg9[%c12_41, %c0_42, %c0_43], %237 {strides = array<i32>} : memref<16x16x128xbf16, #tpu.memory_space<vmem>>, vector<4x16x128xbf16>,
    %c0_44 = arith.constant 0 : index
    %c0_45 = arith.constant 0 : index
    %c0_46 = arith.constant 0 : index
    %239 = vector.load %arg9[%c0_44, %c0_45, %c0_46] : memref<16x16x128xbf16, #tpu.memory_space<vmem>>, vector<16x16x128xbf16>
    %240 = vector.shape_cast %239 : vector<16x16x128xbf16> to vector<256x128xbf16>
    %c0_47 = arith.constant 0 : index
    %c0_48 = arith.constant 0 : index
    %241 = vector.load %arg6[%c0_47, %c0_48] : memref<128x128xbf16, #tpu.memory_space<vmem>>, vector<128x128xbf16>
    %cst_49 = arith.constant dense<0.000000e+00> : vector<256x128xf32>
    %242 = tpu.matmul %240, %241, %cst_49 {dimension_numbers = #tpu.dot_dimension_numbers<[1], [0], [0], [1], [0, 0, 1, 1], [], []>} : vector<256x128xbf16>, vector<128x128xbf16>, vector<256x128xf32> -> vector<256x128xf32>
    %c0_50 = arith.constant 0 : index
    %c0_51 = arith.constant 0 : index
    %243 = vector.load %arg7[%c0_50, %c0_51] : memref<1x128xf32, #tpu.memory_space<vmem>>, vector<1x128xf32>
    %244 = vector.broadcast %243 : vector<1x128xf32> to vector<256x128xf32>
    %245 = arith.addf %242, %244 : vector<256x128xf32>
    %246 = vector.shape_cast %245 : vector<256x128xf32> to vector<16x16x128xf32>
    %247 = arith.truncf %246 : vector<16x16x128xf32> to vector<16x16x128xbf16>
    %c0_52 = arith.constant 0 : index
    %c0_53 = arith.constant 0 : index
    %c0_54 = arith.constant 0 : index
    %c0_55 = arith.constant 0 : index
    %248 = vector.load %arg8[%c0_52, %c0_53, %c0_54, %c0_55] : memref<1x16x16x128xbf16, #tpu.memory_space<vmem>>, vector<1x16x16x128xbf16>
    %249 = vector.shape_cast %248 : vector<1x16x16x128xbf16> to vector<16x16x128xbf16>
    %250 = vector.shape_cast %247 : vector<16x16x128xbf16> to vector<1x16x16x128xbf16>
    tpu.vector_store %arg8[%c0_52, %c0_53, %c0_54, %c0_55], %250 {strides = array<i32>} : memref<1x16x16x128xbf16, #tpu.memory_space<vmem>>, vector<1x16x16x128xbf16>,
    return
  }
  func.func @transform_0(%arg0: i32, %arg1: i32) -> (i32, i32, i32, i32, i32) {
    %c0_i32 = arith.constant 0 : i32
    %c0_i32_0 = arith.constant 0 : i32
    %c0_i32_1 = arith.constant 0 : i32
    %c0_i32_2 = arith.constant 0 : i32
    return %arg0, %arg1, %c0_i32, %c0_i32_0, %c0_i32_1 : i32, i32, i32, i32, i32
  }
  func.func @transform_1(%arg0: i32, %arg1: i32) -> (i32, i32, i32, i32, i32) {
    %c0_i32 = arith.constant 0 : i32
    %c0_i32_0 = arith.constant 0 : i32
    %c0_i32_1 = arith.constant 0 : i32
    %c0_i32_2 = arith.constant 0 : i32
    return %arg0, %arg1, %c0_i32, %c0_i32_0, %c0_i32_1 : i32, i32, i32, i32, i32
  }
  func.func @transform_2(%arg0: i32, %arg1: i32) -> (i32, i32) {
    %c0_i32 = arith.constant 0 : i32
    %c0_i32_0 = arith.constant 0 : i32
    %c0_i32_1 = arith.constant 0 : i32
    return %c0_i32, %c0_i32_0 : i32, i32
  }
  func.func @transform_3(%arg0: i32, %arg1: i32) -> (i32, i32) {
    %c0_i32 = arith.constant 0 : i32
    %c0_i32_0 = arith.constant 0 : i32
    %c0_i32_1 = arith.constant 0 : i32
    return %c0_i32, %c0_i32_0 : i32, i32
  }
  func.func @transform_4(%arg0: i32, %arg1: i32) -> (i32, i32) {
    %c0_i32 = arith.constant 0 : i32
    %c0_i32_0 = arith.constant 0 : i32
    %c0_i32_1 = arith.constant 0 : i32
    return %c0_i32, %c0_i32_0 : i32, i32
  }
  func.func @transform_5(%arg0: i32, %arg1: i32) -> (i32, i32) {
    %c0_i32 = arith.constant 0 : i32
    %c0_i32_0 = arith.constant 0 : i32
    %c0_i32_1 = arith.constant 0 : i32
    return %c0_i32, %c0_i32_0 : i32, i32
  }
  func.func @transform_6(%arg0: i32, %arg1: i32) -> (i32, i32, i32, i32) {
    %c0_i32 = arith.constant 0 : i32
    %c0_i32_0 = arith.constant 0 : i32
    %c0_i32_1 = arith.constant 0 : i32
    return %arg0, %arg1, %c0_i32, %c0_i32_0 : i32, i32, i32, i32
  }
}

</mosaic_0001>

<bundles_post_ra>
// kernel: tpu_custom_call.1
= control target key start
LH: loop header
LB: loop body
LE: loop exit
PB: predicated region body
PF: predicated region fallthrough
CT: control target
= control target key end

     0   :  { %11 = vsyncpa [#allocation4], 0  ;;  %s4746_s0 = inlined_call_operand.vmem [shape: bf16[2,1,16,18,128], index: 0, kind: input, shape index: {}]   ;;  %s4747_s1 = inlined_call_operand.vmem [shape: bf16[2,1,2,18,128], index: 1, kind: input, shape index: {}]   ;;  %s4748_s2 = inlined_call_operand.vmem [shape: f32[9,128], index: 2, kind: input, shape index: {}]   ;;  %s4749_s3 = inlined_call_operand.vmem [shape: f32[1,128], index: 3, kind: input, shape index: {}]   ;;  %s4750_s4 = inlined_call_operand.vmem [shape: bf16[128,128], index: 4, kind: input, shape index: {}]   ;;  %s4751_s5 = inlined_call_operand.vmem [shape: f32[1,128], index: 5, kind: input, shape index: {}]   ;;  %s4752_s6 = inlined_call_operand.hbm [shape: bf16[2,16,16,128], index: 6, kind: output, shape index: {}]  }
   0x1   :  { %13 = vsyncpa [#allocation4 + $0x1], 0  ;;  %s3345_s21 = smov 0   ;;  %s3347_s22 = smov 0  }
   0x2   :  { %s3349_s23 = smov 0   ;;  %s3351_s24 = smov 0  }
   0x3   :  { %s3353_s25 = smov 0   ;;  %s3355_s26 = smov 0  }
   0x4 LB: > { %s2711_s27 = sadd.s32 4294967295, %s3306_s26   ;;  %s2712_s28 = sadd.s32 4294967294, %s3306_s26   ;;  %s3306_s26 = sphi %s3355_s26, %s19_s26   ;;  %s3302_s25 = sphi %s3353_s25, %s4759_s25   ;;  %s3298_s24 = sphi %s3351_s24, %s4758_s24   ;;  %s3294_s23 = sphi %s3349_s23, %s4757_s23   ;;  %s3290_s22 = sphi %s3347_s22, %s4756_s22   ;;  %s3286_s21 = sphi %s3345_s21, %s4755_s21  }
   0x5   : > { %s31_s29 = sadd.s32 1, %s3302_s25  ;;  %s180_s30 = sadd.s32 1, %s3294_s23 }
   0x6   : > { %p33_p0 = scmp.ge.s32.totalorder %s31_s29, 2  ;;  %p190_p1 = scmp.ne.s32.totalorder %s3294_s23, %s3290_s22 }
   0x7   : > { %p191_p2 = scmp.eq.s32.totalorder %s2711_s27, 1  ;;  %p196_p3 = scmp.ne.s32.totalorder %s3290_s22, %s3286_s21 }
   0x8   : > { %s4761_s29 = smov (%p33_p0, %s31_s29), 0  ;;  %p197_p5 = scmp.eq.s32.totalorder %s2712_s28, 1 }
   0x9   : > { %p3385_p4 = por %p191_p2, %p190_p1  ;;  %s175_s8 = ssub.s32 %s3302_s25, %s4761_s29 }
   0xa   : > { %p2715_p6 = scmp.ge.s32.totalorder %s3306_s26, 1  ;;  %p178_p7 = scmp.eq.s32.totalorder %s175_s8, 0 }
   0xb   : > { %p3392_p8 = por %p197_p5, %p196_p3  ;;  %p251_p9 = scmp.lt.s32.totalorder %s3306_s26, 3 }
   0xc   : > { %s3398_s10 = scalar_select %p178_p7, %s3294_s23, %s180_s30  }
   0xd   : > { %p252_p10 = pnand %p2715_p6, %p251_p9 }
   0xe   : > { %p294_p11 = scmp.lt.s32.totalorder (!%p252_p10), %s3298_s24, 1  ;;  %s291_s12 = sand.u32 (!%p252_p10), 1, %s3290_s22  }
   0xf   : > { %255 = sbr.rel (%p252_p10) target bundleno = 518 (0x206), region = 44  ;;  %s2716_s13 = sshll.u32 (!%p252_p10), %s291_s12, 7 }
  0x10   : > { %s4665_s14 = scalar_lea.vmem (!%p252_p10), [#allocation3], %s2716_s13  ;;  %s2892_s16 = sshll.u32 (!%p252_p10), %s3298_s24, 7 }
  0x11   : > { %s2590_s27 = scalar_lea.sflag (!%p252_p10), [#allocation4], %s291_s12  ;;  %s3248_s11 = scalar_lea.hbm (!%p252_p10), %s4752_s6, 256 }
  0x14   : > { %v2891_v0 = vld [vmem:[%s4750_s4 + $0x38] sm:$0xff]  ;;  %v2890_v1 = vld [vmem:[%s4750_s4 + $0x30] sm:$0xff]  ;;  %s3408_s15 = scalar_select %p294_p11, %s3298_s24, 1  ;;  %v313_v2 = vld [vmem:[%s4748_s2] sm:$0xff]  ;;  %vm386_vm0 = vcmask 1046528   ;;  %vm448_vm1 = vcmask 1045504  }
  0x15   : > { %2436 = vmatpush.bf16.msra.mxu0 %v2891_v0  ;;  %3138 = vmatpush.bf16.msra.mxu1 %v2891_v0  ;;  %v2889_v3 = vld [vmem:[%s4750_s4 + $0x28] sm:$0xff]  ;;  %v3417_v4 = vperm.slane %v313_v2, 0  ;;  %v3419_v5 = vperm.slane %v313_v2, 1  ;;  %v3426_v6 = vperm.slane %v313_v2, 2  ;;  %v3428_v7 = vperm.slane %v313_v2, 3  ;;  %v2888_v27 = vld [vmem:[%s4750_s4 + $0x20] sm:$0xff] }
  0x16   : > { %3139 = vmatpush.bf16.msra.mxu2 %v2891_v0  ;;  %3140 = vmatpush.bf16.msra.mxu3 %v2891_v0  ;;  %s3162_s18 = smul.u32 192, %s3408_s15  ;;  %v3430_v8 = vperm.slane %v313_v2, 4  ;;  %v3432_v9 = vperm.slane %v313_v2, 5  ;;  %v3437_v13 = vperm.slane %v313_v2, 6  ;;  %v3439_v14 = vperm.slane %v313_v2, 7  ;;  %v2887_v44 = vld [vmem:[%s4750_s4 + $0x18] sm:$0xff] }
  0x17   : > { %v2886_v62 = vld [vmem:[%s4750_s4 + $0x10] sm:$0xff]  ;;  %s3163_s17 = smul.u32 24, %s3408_s15 }
  0x18   : > { %s3424_s30 = scalar_lea.vmem %s4746_s0, %s3162_s18  ;;  %s2604_s18 = scalar_lea.hbm %s4752_s6, %s2892_s16 }
  0x19   : > { %2437 = vmatpush.bf16.msra.mxu0 %v2890_v1  ;;  %3141 = vmatpush.bf16.msra.mxu1 %v2890_v1  ;;  %v2894_v10 = vld [vmem:[%s3424_s30] sm:$0xff]   ;;  %v318_v11 = vld [vmem:[%s3424_s30 + $0x8] sm:$0x1]  ;;  %v319_v12 = vld [vmem:[%s3424_s30 + $0xc] sm:$0xff]   ;;  %s4249_s19 = scalar_lea.vmem %s4747_s1, %s3163_s17  ;;  %s2607_s20 = sshll.u32 %s2604_s18, 4  ;;  %s2608_s20 = int_to_ptr.hbm [resolvable:$true] %s2607_s20 }
  0x1a   : > { %3142 = vmatpush.bf16.msra.mxu2 %v2890_v1  ;;  %3143 = vmatpush.bf16.msra.mxu3 %v2890_v1  ;;  %v2895_v15 = vunpack.c.l.bf16 %v2894_v10  ;;  %v2896_v16 = vunpack.c.h.bf16 %v2894_v10  ;;  %v321_v17 = vld [vmem:[%s3424_s30 + $0x14] sm:$0x1]  ;;  %v3101_v18 = vld [vmem:[%s3424_s30 + $0x18] sm:$0xff]   ;;  %v324_v19 = vld [vmem:[%s3424_s30 + $0x20] sm:$0x1]  ;;  %v336_v20 = vunpack.c.l.bf16 %v318_v11  ;;  %v3444_v21 = vunpack.c.l.bf16 %v319_v12  ;;  %s3242_s28 = sshra.s32 %s2608_s20, 4  ;;  %s3243_s28 = int_to_ptr.hbm [resolvable:$true] %s3242_s28 }
  0x1b   : > { %v3446_v22 = vunpack.c.l.bf16 %v3101_v18  ;;  %v3448_v23 = vunpack.c.h.bf16 %v3101_v18  ;;  %v3450_v24 = vunpack.c.h.bf16 %v319_v12  ;;  %v3452_v25 = vunpack.c.l.bf16 %v321_v17  ;;  %v3106_v26 = vld [vmem:[%s3424_s30 + $0x30] sm:$0xff]   ;;  %v3107_v53 = vld [vmem:[%s3424_s30 + $0x48] sm:$0xff]   ;;  %s3244_s24 = scalar_lea.hbm %s3243_s28, 128  ;;  %p3249_p1 = scmp.lt.s32.totalorder %s3243_s28, %s4752_s6 }
  0x1c   : > { %v3458_v28 = vunpack.c.l.bf16 %v324_v19  ;;  %v353_v29 = vmul.f32 %v2895_v15, %v3417_v4  ;;  %v354_v30 = vmul.f32 %v2896_v16, %v3417_v4  ;;  %v362_v31 = vmul.f32 %v2895_v15, %v3419_v5  ;;  %v3508_v19 = vld [vmem:[%s4748_s2 + $0x8] ss:$0 sm:$0xff]  ;;  %p3245_p12 = scmp.ne.s32.totalorder %s3243_s28, %s3244_s24  ;;  %p3250_p2 = scmp.lt.s32.totalorder %s3248_s11, %s3244_s24 }
  0x1d   : > { %2438 = vmatpush.bf16.msra.mxu0 %v2889_v3  ;;  %3144 = vmatpush.bf16.msra.mxu1 %v2889_v3  ;;  %v363_v32 = vmul.f32 %v2896_v16, %v3419_v5  ;;  %v364_v33 = vmul.f32 %v3419_v5, %v336_v20  ;;  %v424_v34 = vmul.f32 %v2895_v15, %v3426_v6  ;;  %v3466_v35 = vunpack.c.l.bf16 %v3106_v26 }
  0x1e   : > { %3145 = vmatpush.bf16.msra.mxu2 %v2889_v3  ;;  %3146 = vmatpush.bf16.msra.mxu3 %v2889_v3  ;;  %v387_v36 = vrot.slane %v362_v31, 1  ;;  %v425_v37 = vmul.f32 %v2896_v16, %v3426_v6  ;;  %v426_v38 = vmul.f32 %v3426_v6, %v336_v20  ;;  %v486_v39 = vmul.f32 %v3428_v7, %v3444_v21  ;;  %p3246_p13 = pnand %p3245_p12, %p3385_p4  ;;  %p3251_p3 = por %p3250_p2, %p3249_p1 }
  0x1f   : > { %v388_v40 = vrot.slane %v363_v32, 1  ;;  %v390_v41 = vrot.slane %v364_v33, 1  ;;  %v449_v42 = vrot.slane %v424_v34, 2  ;;  %v487_v43 = vmul.f32 %v3428_v7, %v3450_v24  ;;  %v2721_v34 = vld [vmem:[%s3424_s30 + $0x38] sm:$0x1] }
  0x20   : > { %v450_v45 = vrot.slane %v425_v37, 2  ;;  %v452_v46 = vrot.slane %v426_v38, 2  ;;  %v503_v47 = vmul.f32 %v3430_v8, %v3444_v21  ;;  %v504_v48 = vmul.f32 %v3430_v8, %v3450_v24  ;;  %p3247_p0 = pneg %p3246_p13 }
  0x21   : > { %2439 = vmatpush.bf16.msra.mxu0 %v2888_v27  ;;  %3147 = vmatpush.bf16.msra.mxu1 %v2888_v27  ;;  %v389_v49 = vsel %vm386_vm0, %v387_v36, %v388_v40  ;;  %v391_v50 = vsel %vm386_vm0, %v388_v40, %v390_v41  ;;  %v505_v51 = vmul.f32 %v3430_v8, %v3452_v25  ;;  %v3485_v52 = vunpack.c.h.bf16 %v3106_v26 }
  0x22   : > { %3148 = vmatpush.bf16.msra.mxu2 %v2888_v27  ;;  %3149 = vmatpush.bf16.msra.mxu3 %v2888_v27  ;;  %v415_v54 = vadd.f32 %v389_v49, %v353_v29  ;;  %v416_v55 = vadd.f32 %v391_v50, %v354_v30  ;;  %v451_v56 = vsel %vm448_vm1, %v449_v42, %v450_v45  ;;  %v527_v58 = vrot.slane %v503_v47, 1  ;;  %v2885_v30 = vld [vmem:[%s4750_s4 + $0x8] sm:$0xff]  ;;  %v2724_v49 = vld [vmem:[%s3424_s30 + $0x44] sm:$0x1]  ;;  %p3252_p5 = pnand %p3251_p3, %p3247_p0 }
  0x23   : > { %v453_v57 = vsel %vm448_vm1, %v450_v45, %v452_v46  ;;  %v528_v59 = vrot.slane %v504_v48, 1  ;;  %v530_v60 = vrot.slane %v505_v51, 1  ;;  %v564_v61 = vmul.f32 %v3432_v9, %v3444_v21  ;;  %v2722_v45 = vld [vmem:[%s3424_s30 + $0x3c] sm:$0xff]  }
  0x24   : > { %v477_v63 = vadd.f32 %v451_v56, %v415_v54  ;;  %v478_v0 = vadd.f32 %v453_v57, %v416_v55  ;;  %v565_v1 = vmul.f32 %v3432_v9, %v3450_v24  ;;  %v3497_v2 = vunpack.c.l.bf16 %v3107_v53  ;;  %v2884_v51 = vld [vmem:[%s4750_s4] sm:$0xff]  ;;  %v2727_v57 = vld [vmem:[%s3424_s30 + $0x50] sm:$0x1] }
  0x25   : > { %2440 = vmatpush.bf16.msra.mxu0 %v2887_v44  ;;  %3150 = vmatpush.bf16.msra.mxu1 %v2887_v44  ;;  %v529_v3 = vsel %vm386_vm0, %v527_v58, %v528_v59  ;;  %v531_v10 = vsel %vm386_vm0, %v528_v59, %v530_v60  ;;  %v566_v11 = vmul.f32 %v3432_v9, %v3452_v25  ;;  %v588_v12 = vrot.slane %v564_v61, 2 }
  0x26   : > { %3151 = vmatpush.bf16.msra.mxu2 %v2887_v44  ;;  %3152 = vmatpush.bf16.msra.mxu3 %v2887_v44  ;;  %v494_v15 = vadd.f32 %v486_v39, %v477_v63  ;;  %v495_v16 = vadd.f32 %v487_v43, %v478_v0  ;;  %v589_v17 = vrot.slane %v565_v1, 2  ;;  %v625_v18 = vmul.f32 %v3446_v22, %v3437_v13 }
  0x27   : > { %v591_v20 = vrot.slane %v566_v11, 2  ;;  %v626_v26 = vmul.f32 %v3448_v23, %v3437_v13  ;;  %v642_v27 = vmul.f32 %v3446_v22, %v3439_v14  ;;  %v643_v29 = vmul.f32 %v3448_v23, %v3439_v14 }
  0x28   : > { %v555_v31 = vadd.f32 %v529_v3, %v494_v15  ;;  %v556_v32 = vadd.f32 %v531_v10, %v495_v16  ;;  %v590_v33 = vsel %vm448_vm1, %v588_v12, %v589_v17  ;;  %v3521_v36 = vunpack.c.h.bf16 %v3107_v53  ;;  %v3549_v3 = vld [vmem:[%s4749_s3] ss:$0 sm:$0xff] }
  0x29   : > { %2441 = vmatpush.bf16.msra.mxu0 %v2886_v62  ;;  %3153 = vmatpush.bf16.msra.mxu1 %v2886_v62  ;;  %v592_v37 = vsel %vm448_vm1, %v589_v17, %v591_v20  ;;  %v644_v38 = vmul.f32 %v3439_v14, %v3458_v28  ;;  %v666_v39 = vrot.slane %v642_v27, 1  ;;  %v667_v40 = vrot.slane %v643_v29, 1 }
  0x2a   : > { %3154 = vmatpush.bf16.msra.mxu2 %v2886_v62  ;;  %3155 = vmatpush.bf16.msra.mxu3 %v2886_v62  ;;  %v616_v41 = vadd.f32 %v590_v33, %v555_v31  ;;  %v617_v42 = vadd.f32 %v592_v37, %v556_v32  ;;  %v703_v43 = vmul.f32 %v3508_v19, %v3446_v22  ;;  %v827_v50 = vunpack.c.l.bf16 %v2721_v34  ;;  %v3112_v62 = vld [vmem:[%s3424_s30 + $0x60] sm:$0xff]  }
  0x2b   : > { %v704_v44 = vmul.f32 %v3508_v19, %v3448_v23  ;;  %v668_v46 = vsel %vm386_vm0, %v666_v39, %v667_v40  ;;  %v669_v47 = vrot.slane %v644_v38, 1  ;;  %v705_v48 = vmul.f32 %v3508_v19, %v3458_v28 }
  0x2c   : > { %v633_v53 = vadd.f32 %v625_v18, %v616_v41  ;;  %v634_v54 = vadd.f32 %v626_v26, %v617_v42  ;;  %v727_v55 = vrot.slane %v703_v43, 2  ;;  %v3540_v60 = vunpack.c.l.bf16 %v2722_v45 }
  0x2d   : > { %2442 = vmatpush.bf16.msra.mxu0 %v2885_v30  ;;  %3156 = vmatpush.bf16.msra.mxu1 %v2885_v30  ;;  %v728_v56 = vrot.slane %v704_v44, 2  ;;  %v670_v58 = vsel %vm386_vm0, %v667_v40, %v669_v47  ;;  %v730_v59 = vrot.slane %v705_v48, 2  ;;  %v3542_v61 = vunpack.c.h.bf16 %v2722_v45 }
  0x2e   : > { %3157 = vmatpush.bf16.msra.mxu2 %v2885_v30  ;;  %3158 = vmatpush.bf16.msra.mxu3 %v2885_v30  ;;  %v694_v63 = vadd.f32 %v668_v46, %v633_v53  ;;  %v695_v0 = vadd.f32 %v670_v58, %v634_v54  ;;  %v3551_v10 = vunpack.c.l.bf16 %v2724_v49  ;;  %v3554_v12 = vunpack.c.l.bf16 %v2727_v57 }
  0x2f   : > { %v729_v1 = vsel %vm448_vm1, %v727_v55, %v728_v56  ;;  %v731_v11 = vsel %vm448_vm1, %v728_v56, %v730_v59  ;;  %v843_v15 = vmul.f32 %v3466_v35, %v3417_v4  ;;  %v844_v16 = vmul.f32 %v3485_v52, %v3417_v4 }
  0x30   : > { %v755_v17 = vadd.f32 %v729_v1, %v694_v63  ;;  %v756_v18 = vadd.f32 %v731_v11, %v695_v0  ;;  %v851_v20 = vmul.f32 %v3466_v35, %v3419_v5  ;;  %v3562_v26 = vunpack.c.l.bf16 %v3112_v62 }
  0x31   : > { %2443 = vmatpush.bf16.msra.mxu0 %v2884_v51  ;;  %3159 = vmatpush.bf16.msra.mxu1 %v2884_v51  ;;  %v852_v27 = vmul.f32 %v3485_v52, %v3419_v5  ;;  %v853_v29 = vmul.f32 %v827_v50, %v3419_v5  ;;  %v911_v30 = vmul.f32 %v3466_v35, %v3426_v6  ;;  %v3569_v31 = vunpack.c.h.bf16 %v3112_v62 }
  0x32   : > { %3160 = vmatpush.bf16.msra.mxu2 %v2884_v51  ;;  %3161 = vmatpush.bf16.msra.mxu3 %v2884_v51  ;;  %v766_v32 = vadd.f32 %v3549_v3, %v755_v17  ;;  %v767_v33 = vadd.f32 %v3549_v3, %v756_v18  ;;  %v875_v34 = vrot.slane %v851_v20, 1  ;;  %v912_v37 = vmul.f32 %v3485_v52, %v3426_v6 }
  0x33   : > { %v876_v38 = vrot.slane %v852_v27, 1  ;;  %v878_v39 = vrot.slane %v853_v29, 1  ;;  %v913_v40 = vmul.f32 %v827_v50, %v3426_v6  ;;  %v935_v41 = vrot.slane %v911_v30, 2 }
  0x34   : > { %v774_v42 = vmax.f32 %v766_v32, 0.0  ;;  %v775_v43 = vmax.f32 %v767_v33, 0.0  ;;  %v936_v44 = vrot.slane %v912_v37, 2  ;;  %v971_v35 = vmul.f32 %v3540_v60, %v3428_v7 }
  0x35   : > { %v877_v45 = vsel %vm386_vm0, %v875_v34, %v876_v38  ;;  %v879_v46 = vsel %vm386_vm0, %v876_v38, %v878_v39  ;;  %v938_v47 = vrot.slane %v913_v40, 2  ;;  %v972_v48 = vmul.f32 %v3542_v61, %v3428_v7 }
  0x36   : > { %v782_v52 = vmin.f32 %v774_v42, 6.0  ;;  %v783_v49 = vmin.f32 %v775_v43, 6.0  ;;  %v903_v51 = vadd.f32 %v877_v45, %v843_v15  ;;  %v904_v53 = vadd.f32 %v879_v46, %v844_v16  ;;  %v3113_v45 = vld [vmem:[%s3424_s30 + $0x78] sm:$0xff]  }
  0x37   : > { %v937_v50 = vsel %vm448_vm1, %v935_v41, %v936_v44  ;;  %v939_v54 = vsel %vm448_vm1, %v936_v44, %v938_v47  ;;  %v987_v55 = vmul.f32 %v3540_v60, %v3430_v8  ;;  %v988_v56 = vmul.f32 %v3542_v61, %v3430_v8 }
  0x38   : > { %v2908_v57 = vpack.c.bf16 %v783_v49, %v782_v52  ;;  %v963_v58 = vadd.f32 %v937_v50, %v903_v51  ;;  %v964_v59 = vadd.f32 %v939_v54, %v904_v53  ;;  %v989_v62 = vmul.f32 %v3551_v10, %v3430_v8  ;;  %v2739_v54 = vld [vmem:[%s3424_s30 + $0x68] sm:$0x1] }
  0x39   : > { %v1011_v63 = vrot.slane %v987_v55, 1  ;;  %v1012_v0 = vrot.slane %v988_v56, 1  ;;  %v1047_v1 = vmul.f32 %v3540_v60, %v3432_v9  ;;  %v1048_v11 = vmul.f32 %v3542_v61, %v3432_v9  ;;  %v2740_v55 = vld [vmem:[%s3424_s30 + $0x6c] sm:$0xff]  }
  0x3a   : > { %2909 = vst [vmem:[#allocation2 + $0x30] sm:$0xff] %v2908_v57   ;;  %v979_v15 = vadd.f32 %v971_v35, %v963_v58  ;;  %v980_v16 = vadd.f32 %v972_v48, %v964_v59  ;;  %v1014_v17 = vrot.slane %v989_v62, 1  ;;  %v1049_v18 = vmul.f32 %v3551_v10, %v3432_v9  ;;  %v2742_v62 = vld [vmem:[%s3424_s30 + $0x74] sm:$0x1] }
  0x3b   : > { %v1013_v20 = vsel %vm386_vm0, %v1011_v63, %v1012_v0  ;;  %v1071_v27 = vrot.slane %v1047_v1, 2  ;;  %v1072_v29 = vrot.slane %v1048_v11, 2  ;;  %v1107_v30 = vmul.f32 %v3497_v2, %v3437_v13 }
  0x3c   : > { %v1015_v32 = vsel %vm386_vm0, %v1012_v0, %v1014_v17  ;;  %v1039_v33 = vadd.f32 %v1013_v20, %v979_v15  ;;  %v1074_v34 = vrot.slane %v1049_v18, 2  ;;  %v1108_v37 = vmul.f32 %v3521_v36, %v3437_v13 }
  0x3d   : > { %v1040_v38 = vadd.f32 %v1015_v32, %v980_v16  ;;  %v1073_v39 = vsel %vm448_vm1, %v1071_v27, %v1072_v29  ;;  %v1123_v40 = vmul.f32 %v3497_v2, %v3439_v14  ;;  %v1124_v41 = vmul.f32 %v3521_v36, %v3439_v14  ;;  %v2745_v16 = vld [vmem:[%s3424_s30 + $0x80] sm:$0x1] }
  0x3e   : > { %v1075_v42 = vsel %vm448_vm1, %v1072_v29, %v1074_v34  ;;  %v1099_v43 = vadd.f32 %v1073_v39, %v1039_v33  ;;  %v1125_v44 = vmul.f32 %v3554_v12, %v3439_v14  ;;  %v1183_v35 = vmul.f32 %v3508_v19, %v3497_v2 }
  0x3f   : > { %v1100_v46 = vadd.f32 %v1075_v42, %v1040_v38  ;;  %v1147_v47 = vrot.slane %v1123_v40, 1  ;;  %v1148_v48 = vrot.slane %v1124_v41, 1  ;;  %v1184_v52 = vmul.f32 %v3508_v19, %v3521_v36 }
  0x40   : > { %v1115_v49 = vadd.f32 %v1107_v30, %v1099_v43  ;;  %v1150_v51 = vrot.slane %v1125_v44, 1  ;;  %v1185_v53 = vmul.f32 %v3508_v19, %v3554_v12  ;;  %v1207_v50 = vrot.slane %v1183_v35, 2 }
  0x41   : > { %v2868_v56 = vld [vmem:[#allocation2 + $0x30] sm:$0xff]  ;;  %v1116_v57 = vadd.f32 %v1108_v37, %v1100_v46  ;;  %v1149_v58 = vsel %vm386_vm0, %v1147_v47, %v1148_v48  ;;  %v1208_v59 = vrot.slane %v1184_v52, 2  ;;  %v3621_v63 = vunpack.c.l.bf16 %v3113_v45 }
  0x42   : > { %v1151_v0 = vsel %vm386_vm0, %v1148_v48, %v1150_v51  ;;  %v1175_v1 = vadd.f32 %v1149_v58, %v1115_v49  ;;  %v1210_v11 = vrot.slane %v1185_v53, 2  ;;  %v3624_v15 = vunpack.c.h.bf16 %v3113_v45  ;;  %2444 = vmatmul.bf16.vlgmr.msra.gmra.mxu0 %v2868_v56 }
  0x43   : > { %v1176_v17 = vadd.f32 %v1151_v0, %v1116_v57  ;;  %v1209_v18 = vsel %vm448_vm1, %v1207_v50, %v1208_v59  ;;  %v1305_v20 = vunpack.c.l.bf16 %v2739_v54  ;;  %v3628_v27 = vunpack.c.l.bf16 %v2740_v55 }
  0x44   : > { %v1211_v29 = vsel %vm448_vm1, %v1208_v59, %v1210_v11  ;;  %v1235_v30 = vadd.f32 %v1209_v18, %v1175_v1  ;;  %v3631_v32 = vunpack.c.h.bf16 %v2740_v55  ;;  %v3633_v33 = vunpack.c.l.bf16 %v2742_v62 }
  0x45   : > { %v1236_v34 = vadd.f32 %v1211_v29, %v1176_v17  ;;  %v3635_v37 = vunpack.c.l.bf16 %v2745_v16  ;;  %v1321_v38 = vmul.f32 %v3562_v26, %v3417_v4  ;;  %v1322_v39 = vmul.f32 %v3569_v31, %v3417_v4 }
  0x46   : > { %v1243_v40 = vadd.f32 %v3549_v3, %v1235_v30  ;;  %v1329_v41 = vmul.f32 %v3562_v26, %v3419_v5  ;;  %v1330_v42 = vmul.f32 %v3569_v31, %v3419_v5  ;;  %v1331_v43 = vmul.f32 %v1305_v20, %v3419_v5 }
  0x47   : > { %v1244_v44 = vadd.f32 %v3549_v3, %v1236_v34  ;;  %v1389_v35 = vmul.f32 %v3562_v26, %v3426_v6  ;;  %v1390_v45 = vmul.f32 %v3569_v31, %v3426_v6  ;;  %v1391_v46 = vmul.f32 %v1305_v20, %v3426_v6 }
  0x48   : > { %v1251_v47 = vmax.f32 %v1243_v40, 0.0  ;;  %v1353_v48 = vrot.slane %v1329_v41, 1  ;;  %v1354_v52 = vrot.slane %v1330_v42, 1  ;;  %v1356_v49 = vrot.slane %v1331_v43, 1 }
  0x49   : > { %v1252_v51 = vmax.f32 %v1244_v44, 0.0  ;;  %v1413_v53 = vrot.slane %v1389_v35, 2  ;;  %v1414_v50 = vrot.slane %v1390_v45, 2  ;;  %v1416_v54 = vrot.slane %v1391_v46, 2 }
  0x4a   : > { %v1259_v55 = vmin.f32 %v1251_v47, 6.0  ;;  %v1355_v56 = vsel %vm386_vm0, %v1353_v48, %v1354_v52  ;;  %v1357_v57 = vsel %vm386_vm0, %v1354_v52, %v1356_v49  ;;  %v1449_v26 = vmul.f32 %v3628_v27, %v3428_v7 }
  0x4b   : > { %v1260_v58 = vmin.f32 %v1252_v51, 6.0  ;;  %v1381_v31 = vadd.f32 %v1355_v56, %v1321_v38  ;;  %v1382_v59 = vadd.f32 %v1357_v57, %v1322_v39  ;;  %v1415_v62 = vsel %vm448_vm1, %v1413_v53, %v1414_v50 }
  0x4c   : > { %v1417_v0 = vsel %vm448_vm1, %v1414_v50, %v1416_v54  ;;  %v1450_v1 = vmul.f32 %v3631_v32, %v3428_v7  ;;  %v1465_v11 = vmul.f32 %v3628_v27, %v3430_v8  ;;  %v1466_v16 = vmul.f32 %v3631_v32, %v3430_v8 }
  0x4d   : > { %v2940_v17 = vpack.c.bf16 %v1260_v58, %v1259_v55  ;;  %v1441_v18 = vadd.f32 %v1415_v62, %v1381_v31  ;;  %v1442_v20 = vadd.f32 %v1417_v0, %v1382_v59  ;;  %v1467_v29 = vmul.f32 %v3633_v33, %v3430_v8  ;;  %v3118_v58 = vld [vmem:[%s3424_s30 + $0x90] sm:$0xff]  }
  0x4e   : > { %v1489_v30 = vrot.slane %v1465_v11, 1  ;;  %v1490_v34 = vrot.slane %v1466_v16, 1  ;;  %v1525_v38 = vmul.f32 %v3628_v27, %v3432_v9  ;;  %v1526_v39 = vmul.f32 %v3631_v32, %v3432_v9 }
  0x4f   : > { %2941 = vst [vmem:[#allocation2 + $0x50] sm:$0xff] %v2940_v17   ;;  %v1457_v40 = vadd.f32 %v1449_v26, %v1441_v18  ;;  %v1458_v41 = vadd.f32 %v1450_v1, %v1442_v20  ;;  %v1492_v42 = vrot.slane %v1467_v29, 1  ;;  %v1527_v43 = vmul.f32 %v3633_v33, %v3432_v9  ;;  %v3119_v18 = vld [vmem:[%s3424_s30 + $0xa8] sm:$0xff]  }
  0x50   : > { %v1491_v44 = vsel %vm386_vm0, %v1489_v30, %v1490_v34  ;;  %v1549_v35 = vrot.slane %v1525_v38, 2  ;;  %v1550_v45 = vrot.slane %v1526_v39, 2  ;;  %v1585_v46 = vmul.f32 %v3621_v63, %v3437_v13  ;;  %v2757_v39 = vld [vmem:[%s3424_s30 + $0x98] sm:$0x1] }
  0x51   : > { %v1493_v47 = vsel %vm386_vm0, %v1490_v34, %v1492_v42  ;;  %v1517_v48 = vadd.f32 %v1491_v44, %v1457_v40  ;;  %v1552_v52 = vrot.slane %v1527_v43, 2  ;;  %v1586_v49 = vmul.f32 %v3624_v15, %v3437_v13  ;;  %v2758_v40 = vld [vmem:[%s3424_s30 + $0x9c] sm:$0xff]  }
  0x52   : > { %v1518_v51 = vadd.f32 %v1493_v47, %v1458_v41  ;;  %v1551_v53 = vsel %vm448_vm1, %v1549_v35, %v1550_v45  ;;  %v1601_v50 = vmul.f32 %v3621_v63, %v3439_v14  ;;  %v1602_v54 = vmul.f32 %v3624_v15, %v3439_v14  ;;  %v2760_v35 = vld [vmem:[%s3424_s30 + $0xa4] sm:$0x1] }
  0x53   : > { %v1553_v55 = vsel %vm448_vm1, %v1550_v45, %v1552_v52  ;;  %v1577_v56 = vadd.f32 %v1551_v53, %v1517_v48  ;;  %v1603_v57 = vmul.f32 %v3635_v37, %v3439_v14  ;;  %v1661_v26 = vmul.f32 %v3508_v19, %v3621_v63  ;;  %v2763_v45 = vld [vmem:[%s3424_s30 + $0xb0] sm:$0x1] }
  0x54   : > { %v1578_v31 = vadd.f32 %v1553_v55, %v1518_v51  ;;  %v1625_v59 = vrot.slane %v1601_v50, 1  ;;  %v1626_v62 = vrot.slane %v1602_v54, 1  ;;  %v1662_v0 = vmul.f32 %v3508_v19, %v3624_v15 }
  0x55   : > { %v1593_v1 = vadd.f32 %v1585_v46, %v1577_v56  ;;  %v1628_v11 = vrot.slane %v1603_v57, 1  ;;  %v1663_v16 = vmul.f32 %v3508_v19, %v3635_v37  ;;  %v1685_v17 = vrot.slane %v1661_v26, 2 }
  0x56   : > { %v2872_v20 = vld [vmem:[#allocation2 + $0x50] sm:$0xff]  ;;  %v1594_v29 = vadd.f32 %v1586_v49, %v1578_v31  ;;  %v1627_v30 = vsel %vm386_vm0, %v1625_v59, %v1626_v62  ;;  %v1686_v34 = vrot.slane %v1662_v0, 2  ;;  %v2991_v38 = vunpack.c.l.bf16 %v3118_v58 }
  0x57   : > { %v1629_v41 = vsel %vm386_vm0, %v1626_v62, %v1628_v11  ;;  %v1653_v42 = vadd.f32 %v1627_v30, %v1593_v1  ;;  %v1688_v43 = vrot.slane %v1663_v16, 2  ;;  %v2992_v44 = vunpack.c.h.bf16 %v3118_v58  ;;  %2464 = vmatmul.bf16.vlgmr.msra.gmra.mxu1 %v2872_v20 }
  0x58   : > { %v1654_v46 = vadd.f32 %v1629_v41, %v1594_v29  ;;  %v1687_v47 = vsel %vm448_vm1, %v1685_v17, %v1686_v34  ;;  %v3702_v48 = vunpack.c.l.bf16 %v3119_v18  ;;  %v3704_v52 = vunpack.c.h.bf16 %v3119_v18 }
  0x59   : > { %v1689_v49 = vsel %vm448_vm1, %v1686_v34, %v1688_v43  ;;  %v1713_v51 = vadd.f32 %v1687_v47, %v1653_v42  ;;  %v1777_v53 = vunpack.c.l.bf16 %v2757_v39  ;;  %v3707_v50 = vunpack.c.l.bf16 %v2758_v40 }
  0x5a   : > { %v1714_v54 = vadd.f32 %v1689_v49, %v1654_v46  ;;  %v3709_v55 = vunpack.c.h.bf16 %v2758_v40  ;;  %v3711_v56 = vunpack.c.l.bf16 %v2760_v35  ;;  %v3713_v57 = vunpack.c.l.bf16 %v2763_v45 }
  0x5b   : > { %v1721_v26 = vadd.f32 %v3549_v3, %v1713_v51  ;;  %v1799_v58 = vmul.f32 %v2991_v38, %v3417_v4  ;;  %v1800_v31 = vmul.f32 %v2992_v44, %v3417_v4  ;;  %v1807_v59 = vmul.f32 %v2991_v38, %v3419_v5 }
  0x5c   : > { %v1722_v62 = vadd.f32 %v3549_v3, %v1714_v54  ;;  %v1808_v0 = vmul.f32 %v2992_v44, %v3419_v5  ;;  %v1809_v1 = vmul.f32 %v1777_v53, %v3419_v5  ;;  %v1867_v11 = vmul.f32 %v2991_v38, %v3426_v6 }
  0x5d   : > { %v1729_v16 = vmax.f32 %v1721_v26, 0.0  ;;  %v1831_v17 = vrot.slane %v1807_v59, 1  ;;  %v1868_v18 = vmul.f32 %v2992_v44, %v3426_v6  ;;  %v1869_v20 = vmul.f32 %v1777_v53, %v3426_v6 }
  0x5e   : > { %v1730_v29 = vmax.f32 %v1722_v62, 0.0  ;;  %v1832_v30 = vrot.slane %v1808_v0, 1  ;;  %v1834_v34 = vrot.slane %v1809_v1, 1  ;;  %v1891_v39 = vrot.slane %v1867_v11, 2 }
  0x5f   : > { %v1737_v40 = vmin.f32 %v1729_v16, 6.0  ;;  %v1892_v41 = vrot.slane %v1868_v18, 2  ;;  %v1894_v42 = vrot.slane %v1869_v20, 2  ;;  %v1927_v43 = vmul.f32 %v3707_v50, %v3428_v7 }
  0x60   : > { %v1738_v35 = vmin.f32 %v1730_v29, 6.0  ;;  %v1833_v45 = vsel %vm386_vm0, %v1831_v17, %v1832_v30  ;;  %v1835_v38 = vsel %vm386_vm0, %v1832_v30, %v1834_v34  ;;  %v1928_v44 = vmul.f32 %v3709_v55, %v3428_v7 }
  0x61   : > { %v1859_v46 = vadd.f32 %v1833_v45, %v1799_v58  ;;  %v1860_v47 = vadd.f32 %v1835_v38, %v1800_v31  ;;  %v1893_v49 = vsel %vm448_vm1, %v1891_v39, %v1892_v41  ;;  %v1895_v51 = vsel %vm448_vm1, %v1892_v41, %v1894_v42 }
  0x62   : > { %v2972_v53 = vpack.c.bf16 %v1738_v35, %v1737_v40  ;;  %v1943_v54 = vmul.f32 %v3707_v50, %v3430_v8  ;;  %v1944_v26 = vmul.f32 %v3709_v55, %v3430_v8  ;;  %v1945_v59 = vmul.f32 %v3711_v56, %v3430_v8 }
  0x63   : > { %v1919_v62 = vadd.f32 %v1893_v49, %v1859_v46  ;;  %v1920_v0 = vadd.f32 %v1895_v51, %v1860_v47  ;;  %v2003_v58 = vmul.f32 %v3707_v50, %v3432_v9  ;;  %v2004_v31 = vmul.f32 %v3709_v55, %v3432_v9 }
  0x64   : > { %2973 = vst [vmem:[#allocation2 + $0x40] sm:$0xff] %v2972_v53   ;;  %v1967_v1 = vrot.slane %v1943_v54, 1  ;;  %v1968_v11 = vrot.slane %v1944_v26, 1  ;;  %v1970_v16 = vrot.slane %v1945_v59, 1  ;;  %v2005_v17 = vmul.f32 %v3711_v56, %v3432_v9  ;;  %v325_v26 = vld [vmem:[%s3424_s30 + $0x24] sm:$0xff]  }
  0x65   : > { %v1935_v18 = vadd.f32 %v1927_v43, %v1919_v62  ;;  %v1936_v20 = vadd.f32 %v1928_v44, %v1920_v0  ;;  %v2027_v29 = vrot.slane %v2003_v58, 2  ;;  %v2028_v30 = vrot.slane %v2004_v31, 2 }
  0x66   : > { %v1969_v34 = vsel %vm386_vm0, %v1967_v1, %v1968_v11  ;;  %v1971_v39 = vsel %vm386_vm0, %v1968_v11, %v1970_v16  ;;  %v2030_v40 = vrot.slane %v2005_v17, 2  ;;  %v2063_v41 = vmul.f32 %v3702_v48, %v3437_v13 }
  0x67   : > { %v1995_v42 = vadd.f32 %v1969_v34, %v1935_v18  ;;  %v1996_v35 = vadd.f32 %v1971_v39, %v1936_v20  ;;  %v2029_v45 = vsel %vm448_vm1, %v2027_v29, %v2028_v30  ;;  %v2064_v38 = vmul.f32 %v3704_v52, %v3437_v13  ;;  %v327_v18 = vld [vmem:[%s3424_s30 + $0x2c] sm:$0x1] }
  0x68   : > { %v2031_v43 = vsel %vm448_vm1, %v2028_v30, %v2030_v40  ;;  %v2079_v44 = vmul.f32 %v3702_v48, %v3439_v14  ;;  %v2080_v46 = vmul.f32 %v3704_v52, %v3439_v14  ;;  %v2081_v47 = vmul.f32 %v3713_v57, %v3439_v14 }
  0x69   : > { %v2055_v49 = vadd.f32 %v2029_v45, %v1995_v42  ;;  %v2056_v51 = vadd.f32 %v2031_v43, %v1996_v35  ;;  %v2139_v53 = vmul.f32 %v3508_v19, %v3702_v48  ;;  %v2140_v54 = vmul.f32 %v3508_v19, %v3704_v52 }
  0x6a   : > { %v2103_v59 = vrot.slane %v2079_v44, 1  ;;  %v2104_v62 = vrot.slane %v2080_v46, 1  ;;  %v2106_v0 = vrot.slane %v2081_v47, 1  ;;  %v2141_v58 = vmul.f32 %v3508_v19, %v3713_v57 }
  0x6b   : > { %v2876_v31 = vld [vmem:[#allocation2 + $0x40] sm:$0xff]  ;;  %v2071_v1 = vadd.f32 %v2063_v41, %v2055_v49  ;;  %v2072_v11 = vadd.f32 %v2064_v38, %v2056_v51  ;;  %v2163_v16 = vrot.slane %v2139_v53, 2  ;;  %v2164_v17 = vrot.slane %v2140_v54, 2 }
  0x6c   : > { %v2105_v20 = vsel %vm386_vm0, %v2103_v59, %v2104_v62  ;;  %v2107_v29 = vsel %vm386_vm0, %v2104_v62, %v2106_v0  ;;  %v2166_v30 = vrot.slane %v2141_v58, 2  ;;  %v3769_v34 = vunpack.c.l.bf16 %v325_v26  ;;  %2484 = vmatmul.bf16.vlgmr.msra.gmra.mxu2 %v2876_v31 }
  0x6d   : > { %v2131_v39 = vadd.f32 %v2105_v20, %v2071_v1  ;;  %v2132_v40 = vadd.f32 %v2107_v29, %v2072_v11  ;;  %v2165_v42 = vsel %vm448_vm1, %v2163_v16, %v2164_v17  ;;  %v3772_v35 = vunpack.c.h.bf16 %v325_v26 }
  0x6e   : > { %v2167_v41 = vsel %vm448_vm1, %v2164_v17, %v2166_v30  ;;  %v3775_v45 = vunpack.c.l.bf16 %v327_v18  ;;  %v355_v38 = vmul.f32 %v3417_v4, %v3444_v21  ;;  %v356_v43 = vmul.f32 %v3417_v4, %v3450_v24 }
  0x6f   : > { %v2191_v44 = vadd.f32 %v2165_v42, %v2131_v39  ;;  %v2192_v46 = vadd.f32 %v2167_v41, %v2132_v40  ;;  %v365_v47 = vmul.f32 %v3419_v5, %v3444_v21  ;;  %v366_v49 = vmul.f32 %v3419_v5, %v3450_v24 }
  0x70   : > { %v367_v51 = vmul.f32 %v3419_v5, %v3452_v25  ;;  %v427_v53 = vmul.f32 %v3426_v6, %v3444_v21  ;;  %v428_v54 = vmul.f32 %v3426_v6, %v3450_v24  ;;  %v429_v26 = vmul.f32 %v3426_v6, %v3452_v25 }
  0x71   : > { %v2199_v59 = vadd.f32 %v3549_v3, %v2191_v44  ;;  %v2200_v62 = vadd.f32 %v3549_v3, %v2192_v46  ;;  %v392_v0 = vrot.slane %v365_v47, 1  ;;  %v393_v58 = vrot.slane %v366_v49, 1 }
  0x72   : > { %v395_v31 = vrot.slane %v367_v51, 1  ;;  %v454_v1 = vrot.slane %v427_v53, 2  ;;  %v455_v11 = vrot.slane %v428_v54, 2  ;;  %v457_v16 = vrot.slane %v429_v26, 2 }
  0x73   : > { %v2207_v17 = vmax.f32 %v2199_v59, 0.0  ;;  %v2208_v18 = vmax.f32 %v2200_v62, 0.0  ;;  %v394_v21 = vsel %vm386_vm0, %v392_v0, %v393_v58  ;;  %v488_v24 = vmul.f32 %v3446_v22, %v3428_v7 }
  0x74   : > { %v396_v20 = vsel %vm386_vm0, %v393_v58, %v395_v31  ;;  %v417_v25 = vadd.f32 %v394_v21, %v355_v38  ;;  %v456_v29 = vsel %vm448_vm1, %v454_v1, %v455_v11  ;;  %v458_v30 = vsel %vm448_vm1, %v455_v11, %v457_v16 }
  0x75   : > { %v2215_v39 = vmin.f32 %v2207_v17, 6.0  ;;  %v2216_v40 = vmin.f32 %v2208_v18, 6.0  ;;  %v418_v42 = vadd.f32 %v396_v20, %v356_v43  ;;  %v489_v41 = vmul.f32 %v3448_v23, %v3428_v7 }
  0x76   : > { %v479_v44 = vadd.f32 %v456_v29, %v417_v25  ;;  %v506_v46 = vmul.f32 %v3446_v22, %v3430_v8  ;;  %v507_v47 = vmul.f32 %v3448_v23, %v3430_v8  ;;  %v508_v38 = vmul.f32 %v3430_v8, %v3458_v28 }
  0x77   : > { %v3004_v49 = vpack.c.bf16 %v2216_v40, %v2215_v39  ;;  %v480_v51 = vadd.f32 %v458_v30, %v418_v42  ;;  %v567_v53 = vmul.f32 %v3446_v22, %v3432_v9  ;;  %v568_v43 = vmul.f32 %v3448_v23, %v3432_v9 }
  0x78   : > { %v496_v54 = vadd.f32 %v488_v24, %v479_v44  ;;  %v532_v26 = vrot.slane %v506_v46, 1  ;;  %v533_v59 = vrot.slane %v507_v47, 1  ;;  %v535_v62 = vrot.slane %v508_v38, 1  ;;  %v2728_v47 = vld [vmem:[%s3424_s30 + $0x54] sm:$0xff]  }
  0x79   : > { %3005 = vst [vmem:[#allocation2 + $0x60] sm:$0xff] %v3004_v49   ;;  %v497_v0 = vadd.f32 %v489_v41, %v480_v51  ;;  %v569_v58 = vmul.f32 %v3432_v9, %v3458_v28  ;;  %v593_v31 = vrot.slane %v567_v53, 2  ;;  %v594_v1 = vrot.slane %v568_v43, 2 }
  0x7a   : > { %v534_v11 = vsel %vm386_vm0, %v532_v26, %v533_v59  ;;  %v536_v16 = vsel %vm386_vm0, %v533_v59, %v535_v62  ;;  %v627_v17 = vmul.f32 %v3437_v13, %v3769_v34  ;;  %v628_v18 = vmul.f32 %v3437_v13, %v3772_v35  ;;  %v2730_v62 = vld [vmem:[%s3424_s30 + $0x5c] sm:$0x1] }
  0x7b   : > { %v557_v21 = vadd.f32 %v534_v11, %v496_v54  ;;  %v558_v24 = vadd.f32 %v536_v16, %v497_v0  ;;  %v595_v20 = vsel %vm448_vm1, %v593_v31, %v594_v1  ;;  %v596_v25 = vrot.slane %v569_v58, 2 }
  0x7c   : > { %v645_v29 = vmul.f32 %v3439_v14, %v3769_v34  ;;  %v646_v30 = vmul.f32 %v3439_v14, %v3772_v35  ;;  %v647_v39 = vmul.f32 %v3439_v14, %v3775_v45  ;;  %v706_v40 = vmul.f32 %v3508_v19, %v3769_v34 }
  0x7d   : > { %v597_v42 = vsel %vm448_vm1, %v594_v1, %v596_v25  ;;  %v618_v41 = vadd.f32 %v595_v20, %v557_v21  ;;  %v707_v44 = vmul.f32 %v3508_v19, %v3772_v35  ;;  %v708_v46 = vmul.f32 %v3508_v19, %v3775_v45 }
  0x7e   : > { %v619_v38 = vadd.f32 %v597_v42, %v558_v24  ;;  %v671_v49 = vrot.slane %v645_v29, 1  ;;  %v672_v51 = vrot.slane %v646_v30, 1  ;;  %v674_v53 = vrot.slane %v647_v39, 1 }
  0x7f   : > { %v635_v43 = vadd.f32 %v627_v17, %v618_v41  ;;  %v732_v54 = vrot.slane %v706_v40, 2  ;;  %v733_v26 = vrot.slane %v707_v44, 2  ;;  %v735_v59 = vrot.slane %v708_v46, 2 }
  0x80   : > { %v2880_v0 = vld [vmem:[#allocation2 + $0x60] sm:$0xff]  ;;  %v636_v58 = vadd.f32 %v628_v18, %v619_v38  ;;  %v673_v31 = vsel %vm386_vm0, %v671_v49, %v672_v51  ;;  %v675_v1 = vsel %vm386_vm0, %v672_v51, %v674_v53  ;;  %v3839_v11 = vunpack.c.l.bf16 %v2728_v47 }
  0x81   : > { %v696_v16 = vadd.f32 %v673_v31, %v635_v43  ;;  %v734_v21 = vsel %vm448_vm1, %v732_v54, %v733_v26  ;;  %v736_v24 = vsel %vm448_vm1, %v733_v26, %v735_v59  ;;  %v3843_v20 = vunpack.c.h.bf16 %v2728_v47  ;;  %2504 = vmatmul.bf16.vlgmr.msra.gmra.mxu3 %v2880_v0 }
  0x82   : > { %v697_v17 = vadd.f32 %v675_v1, %v636_v58  ;;  %v3845_v25 = vunpack.c.l.bf16 %v2730_v62  ;;  %v845_v18 = vmul.f32 %v3540_v60, %v3417_v4  ;;  %v846_v29 = vmul.f32 %v3542_v61, %v3417_v4 }
  0x83   : > { %v757_v30 = vadd.f32 %v734_v21, %v696_v16  ;;  %v854_v39 = vmul.f32 %v3540_v60, %v3419_v5  ;;  %v855_v40 = vmul.f32 %v3542_v61, %v3419_v5  ;;  %v856_v42 = vmul.f32 %v3551_v10, %v3419_v5 }
  0x84   : > { %v758_v41 = vadd.f32 %v736_v24, %v697_v17  ;;  %v914_v44 = vmul.f32 %v3540_v60, %v3426_v6  ;;  %v915_v46 = vmul.f32 %v3542_v61, %v3426_v6  ;;  %v916_v47 = vmul.f32 %v3551_v10, %v3426_v6 }
  0x85   : > { %v768_v38 = vadd.f32 %v3549_v3, %v757_v30  ;;  %v880_v49 = vrot.slane %v854_v39, 1  ;;  %v881_v51 = vrot.slane %v855_v40, 1  ;;  %v883_v53 = vrot.slane %v856_v42, 1 }
  0x86   : > { %v769_v43 = vadd.f32 %v3549_v3, %v758_v41  ;;  %v940_v54 = vrot.slane %v914_v44, 2  ;;  %v941_v26 = vrot.slane %v915_v46, 2  ;;  %v943_v59 = vrot.slane %v916_v47, 2 }
  0x87   : > { %v776_v62 = vmax.f32 %v768_v38, 0.0  ;;  %v882_v0 = vsel %vm386_vm0, %v880_v49, %v881_v51  ;;  %v884_v60 = vsel %vm386_vm0, %v881_v51, %v883_v53  ;;  %v973_v61 = vmul.f32 %v3497_v2, %v3428_v7 }
  0x88   : > { %v777_v58 = vmax.f32 %v769_v43, 0.0  ;;  %v905_v10 = vadd.f32 %v882_v0, %v845_v18  ;;  %v906_v31 = vadd.f32 %v884_v60, %v846_v29  ;;  %v942_v1 = vsel %vm448_vm1, %v940_v54, %v941_v26 }
  0x89   : > { %v784_v16 = vmin.f32 %v776_v62, 6.0  ;;  %v944_v21 = vsel %vm448_vm1, %v941_v26, %v943_v59  ;;  %v974_v24 = vmul.f32 %v3521_v36, %v3428_v7  ;;  %v990_v17 = vmul.f32 %v3497_v2, %v3430_v8 }
  0x8a   : > { %v785_v30 = vmin.f32 %v777_v58, 6.0  ;;  %v965_v39 = vadd.f32 %v942_v1, %v905_v10  ;;  %v966_v40 = vadd.f32 %v944_v21, %v906_v31  ;;  %v991_v42 = vmul.f32 %v3521_v36, %v3430_v8 }
  0x8b   : > { %v992_v18 = vmul.f32 %v3554_v12, %v3430_v8  ;;  %v1016_v29 = vrot.slane %v990_v17, 1  ;;  %v1050_v41 = vmul.f32 %v3497_v2, %v3432_v9  ;;  %v1051_v44 = vmul.f32 %v3521_v36, %v3432_v9 }
  0x8c   : > { %v2913_v46 = vpack.c.bf16 %v785_v30, %v784_v16  ;;  %v981_v47 = vadd.f32 %v973_v61, %v965_v39  ;;  %v982_v38 = vadd.f32 %v974_v24, %v966_v40  ;;  %v1017_v49 = vrot.slane %v991_v42, 1  ;;  %v2746_v24 = vld [vmem:[%s3424_s30 + $0x84] sm:$0xff]  }
  0x8d   : > { %v1019_v51 = vrot.slane %v992_v18, 1  ;;  %v1052_v53 = vmul.f32 %v3554_v12, %v3432_v9  ;;  %v1076_v43 = vrot.slane %v1050_v41, 2  ;;  %v1077_v54 = vrot.slane %v1051_v44, 2  ;;  %v2748_v44 = vld [vmem:[%s3424_s30 + $0x8c] sm:$0x1] }
  0x8e   : > { %3103 = vst [vmem:[#allocation2] sm:$0xff] %v2913_v46   ;;  %v1018_v26 = vsel %vm386_vm0, %v1016_v29, %v1017_v49  ;;  %v1109_v59 = vmul.f32 %v3839_v11, %v3437_v13  ;;  %v1110_v62 = vmul.f32 %v3843_v20, %v3437_v13  ;;  %v1126_v0 = vmul.f32 %v3839_v11, %v3439_v14 }
  0x8f   : > { %v1020_v60 = vsel %vm386_vm0, %v1017_v49, %v1019_v51  ;;  %v1041_v61 = vadd.f32 %v1018_v26, %v981_v47  ;;  %v1078_v58 = vsel %vm448_vm1, %v1076_v43, %v1077_v54  ;;  %v1079_v10 = vrot.slane %v1052_v53, 2 }
  0x90   : > { %v1042_v31 = vadd.f32 %v1020_v60, %v982_v38  ;;  %v1127_v1 = vmul.f32 %v3843_v20, %v3439_v14  ;;  %v1128_v16 = vmul.f32 %v3845_v25, %v3439_v14  ;;  %v1152_v21 = vrot.slane %v1126_v0, 1 }
  0x91   : > { %v1080_v17 = vsel %vm448_vm1, %v1077_v54, %v1079_v10  ;;  %v1101_v30 = vadd.f32 %v1078_v58, %v1041_v61  ;;  %v1186_v39 = vmul.f32 %v3508_v19, %v3839_v11  ;;  %v1187_v40 = vmul.f32 %v3508_v19, %v3843_v20 }
  0x92   : > { %v1102_v42 = vadd.f32 %v1080_v17, %v1042_v31  ;;  %v1153_v18 = vrot.slane %v1127_v1, 1  ;;  %v1155_v29 = vrot.slane %v1128_v16, 1  ;;  %v1188_v41 = vmul.f32 %v3508_v19, %v3845_v25 }
  0x93   : > { %v1117_v46 = vadd.f32 %v1109_v59, %v1101_v30  ;;  %v1212_v47 = vrot.slane %v1186_v39, 2  ;;  %v1213_v38 = vrot.slane %v1187_v40, 2  ;;  %v3907_v49 = vunpack.c.l.bf16 %v2746_v24 }
  0x94   : > { %v1118_v51 = vadd.f32 %v1110_v62, %v1102_v42  ;;  %v1154_v53 = vsel %vm386_vm0, %v1152_v21, %v1153_v18  ;;  %v1156_v43 = vsel %vm386_vm0, %v1153_v18, %v1155_v29  ;;  %v1215_v54 = vrot.slane %v1188_v41, 2 }
  0x95   : > { %v2869_v26 = vld [vmem:[#allocation2] sm:$0xff]  ;;  %v1177_v0 = vadd.f32 %v1154_v53, %v1117_v46  ;;  %v1214_v60 = vsel %vm448_vm1, %v1212_v47, %v1213_v38  ;;  %v3912_v61 = vunpack.c.h.bf16 %v2746_v24  ;;  %v3914_v58 = vunpack.c.l.bf16 %v2748_v44 }
  0x96   : > { %v1178_v19 = vadd.f32 %v1156_v43, %v1118_v51  ;;  %v1216_v59 = vsel %vm448_vm1, %v1213_v38, %v1215_v54  ;;  %v1323_v10 = vmul.f32 %v3628_v27, %v3417_v4  ;;  %v1324_v62 = vmul.f32 %v3631_v32, %v3417_v4  ;;  %2449 = vmatmul.bf16.gmra.mxu0 %v2869_v26 }
  0x97   : > { %v1237_v31 = vadd.f32 %v1214_v60, %v1177_v0  ;;  %v1332_v1 = vmul.f32 %v3628_v27, %v3419_v5  ;;  %v1333_v16 = vmul.f32 %v3631_v32, %v3419_v5  ;;  %v1334_v21 = vmul.f32 %v3633_v33, %v3419_v5 }
  0x98   : > { %v1238_v24 = vadd.f32 %v1216_v59, %v1178_v19  ;;  %v1392_v17 = vmul.f32 %v3628_v27, %v3426_v6  ;;  %v1393_v30 = vmul.f32 %v3631_v32, %v3426_v6  ;;  %v1394_v39 = vmul.f32 %v3633_v33, %v3426_v6 }
  0x99   : > { %v1245_v40 = vadd.f32 %v3549_v3, %v1237_v31  ;;  %v1358_v42 = vrot.slane %v1332_v1, 1  ;;  %v1359_v18 = vrot.slane %v1333_v16, 1  ;;  %v1361_v29 = vrot.slane %v1334_v21, 1 }
  0x9a   : > { %v1246_v41 = vadd.f32 %v3549_v3, %v1238_v24  ;;  %v1418_v44 = vrot.slane %v1392_v17, 2  ;;  %v1419_v46 = vrot.slane %v1393_v30, 2  ;;  %v1421_v47 = vrot.slane %v1394_v39, 2 }
  0x9b   : > { %v1253_v38 = vmax.f32 %v1245_v40, 0.0  ;;  %v1360_v51 = vsel %vm386_vm0, %v1358_v42, %v1359_v18  ;;  %v1362_v27 = vsel %vm386_vm0, %v1359_v18, %v1361_v29  ;;  %v1451_v32 = vmul.f32 %v3621_v63, %v3428_v7 }
  0x9c   : > { %v1254_v53 = vmax.f32 %v1246_v41, 0.0  ;;  %v1383_v33 = vadd.f32 %v1360_v51, %v1323_v10  ;;  %v1384_v43 = vadd.f32 %v1362_v27, %v1324_v62  ;;  %v1420_v54 = vsel %vm448_vm1, %v1418_v44, %v1419_v46 }
  0x9d   : > { %v1261_v26 = vmin.f32 %v1253_v38, 6.0  ;;  %v1422_v0 = vsel %vm448_vm1, %v1419_v46, %v1421_v47  ;;  %v1452_v3 = vmul.f32 %v3624_v15, %v3428_v7  ;;  %v1468_v60 = vmul.f32 %v3621_v63, %v3430_v8 }
  0x9e   : > { %v1262_v19 = vmin.f32 %v1254_v53, 6.0  ;;  %v1443_v59 = vadd.f32 %v1420_v54, %v1383_v33  ;;  %v1444_v31 = vadd.f32 %v1422_v0, %v1384_v43  ;;  %v1469_v1 = vmul.f32 %v3624_v15, %v3430_v8 }
  0x9f   : > { %v1470_v10 = vmul.f32 %v3635_v37, %v3430_v8  ;;  %v1494_v62 = vrot.slane %v1468_v60, 1  ;;  %v1528_v16 = vmul.f32 %v3621_v63, %v3432_v9  ;;  %v1529_v21 = vmul.f32 %v3624_v15, %v3432_v9  ;;  %v3973_v60 = vld [vmem:[%s4748_s2 + $0x8] ss:$0 sm:$0xff] }
  0xa0   : > { %v2945_v24 = vpack.c.bf16 %v1262_v19, %v1261_v26  ;;  %v1459_v17 = vadd.f32 %v1451_v32, %v1443_v59  ;;  %v1460_v30 = vadd.f32 %v1452_v3, %v1444_v31  ;;  %v1495_v39 = vrot.slane %v1469_v1, 1  ;;  %v2764_v26 = vld [vmem:[%s3424_s30 + $0xb4] sm:$0xff]  }
  0xa1   : > { %v1497_v40 = vrot.slane %v1470_v10, 1  ;;  %v1530_v42 = vmul.f32 %v3635_v37, %v3432_v9  ;;  %v1554_v18 = vrot.slane %v1528_v16, 2  ;;  %v1555_v29 = vrot.slane %v1529_v21, 2  ;;  %v2766_v16 = vld [vmem:[%s3424_s30 + $0xbc] sm:$0x1] }
  0xa2   : > { %3109 = vst [vmem:[#allocation2 + $0x68] sm:$0xff] %v2945_v24   ;;  %v1496_v41 = vsel %vm386_vm0, %v1494_v62, %v1495_v39  ;;  %v1587_v44 = vmul.f32 %v3907_v49, %v3437_v13  ;;  %v1588_v46 = vmul.f32 %v3912_v61, %v3437_v13  ;;  %v1604_v47 = vmul.f32 %v3907_v49, %v3439_v14 }
  0xa3   : > { %v1498_v38 = vsel %vm386_vm0, %v1495_v39, %v1497_v40  ;;  %v1519_v51 = vadd.f32 %v1496_v41, %v1459_v17  ;;  %v1556_v27 = vsel %vm448_vm1, %v1554_v18, %v1555_v29  ;;  %v1557_v32 = vrot.slane %v1530_v42, 2 }
  0xa4   : > { %v1520_v53 = vadd.f32 %v1498_v38, %v1460_v30  ;;  %v1605_v33 = vmul.f32 %v3912_v61, %v3439_v14  ;;  %v1606_v43 = vmul.f32 %v3914_v58, %v3439_v14  ;;  %v1630_v54 = vrot.slane %v1604_v47, 1 }
  0xa5   : > { %v1558_v0 = vsel %vm448_vm1, %v1555_v29, %v1557_v32  ;;  %v1579_v3 = vadd.f32 %v1556_v27, %v1519_v51  ;;  %v1664_v19 = vmul.f32 %v3973_v60, %v3907_v49  ;;  %v1665_v59 = vmul.f32 %v3973_v60, %v3912_v61 }
  0xa6   : > { %v1580_v31 = vadd.f32 %v1558_v0, %v1520_v53  ;;  %v1631_v1 = vrot.slane %v1605_v33, 1  ;;  %v1633_v10 = vrot.slane %v1606_v43, 1  ;;  %v1666_v62 = vmul.f32 %v3973_v60, %v3914_v58 }
  0xa7   : > { %v1595_v21 = vadd.f32 %v1587_v44, %v1579_v3  ;;  %v1690_v24 = vrot.slane %v1664_v19, 2  ;;  %v1691_v17 = vrot.slane %v1665_v59, 2  ;;  %v3982_v30 = vunpack.c.l.bf16 %v2764_v26  ;;  %v4011_v59 = vld [vmem:[%s4749_s3] ss:$0 sm:$0xff] }
  0xa8   : > { %v1596_v39 = vadd.f32 %v1588_v46, %v1580_v31  ;;  %v1632_v40 = vsel %vm386_vm0, %v1630_v54, %v1631_v1  ;;  %v1634_v42 = vsel %vm386_vm0, %v1631_v1, %v1633_v10  ;;  %v1693_v18 = vrot.slane %v1666_v62, 2 }
  0xa9   : > { %v2873_v29 = vld [vmem:[#allocation2 + $0x68] sm:$0xff]  ;;  %v1655_v41 = vadd.f32 %v1632_v40, %v1595_v21  ;;  %v1692_v47 = vsel %vm448_vm1, %v1690_v24, %v1691_v17  ;;  %v3987_v38 = vunpack.c.h.bf16 %v2764_v26  ;;  %v3989_v51 = vunpack.c.l.bf16 %v2766_v16 }
  0xaa   : > { %v1656_v27 = vadd.f32 %v1634_v42, %v1596_v39  ;;  %v1694_v44 = vsel %vm448_vm1, %v1691_v17, %v1693_v18  ;;  %v1801_v32 = vmul.f32 %v3707_v50, %v3417_v4  ;;  %v1802_v46 = vmul.f32 %v3709_v55, %v3417_v4  ;;  %2469 = vmatmul.bf16.gmra.mxu1 %v2873_v29 }
  0xab   : > { %v1715_v53 = vadd.f32 %v1692_v47, %v1655_v41  ;;  %v1810_v33 = vmul.f32 %v3707_v50, %v3419_v5  ;;  %v1811_v43 = vmul.f32 %v3709_v55, %v3419_v5  ;;  %v1812_v54 = vmul.f32 %v3711_v56, %v3419_v5 }
  0xac   : > { %v1716_v26 = vadd.f32 %v1694_v44, %v1656_v27  ;;  %v1870_v0 = vmul.f32 %v3707_v50, %v3426_v6  ;;  %v1871_v3 = vmul.f32 %v3709_v55, %v3426_v6  ;;  %v1872_v19 = vmul.f32 %v3711_v56, %v3426_v6 }
  0xad   : > { %v1723_v31 = vadd.f32 %v4011_v59, %v1715_v53  ;;  %v1836_v1 = vrot.slane %v1810_v33, 1  ;;  %v1837_v10 = vrot.slane %v1811_v43, 1  ;;  %v1839_v62 = vrot.slane %v1812_v54, 1 }
  0xae   : > { %v1724_v16 = vadd.f32 %v4011_v59, %v1716_v26  ;;  %v1896_v21 = vrot.slane %v1870_v0, 2  ;;  %v1897_v50 = vrot.slane %v1871_v3, 2  ;;  %v1899_v24 = vrot.slane %v1872_v19, 2 }
  0xaf   : > { %v1731_v17 = vmax.f32 %v1723_v31, 0.0  ;;  %v1838_v55 = vsel %vm386_vm0, %v1836_v1, %v1837_v10  ;;  %v1840_v56 = vsel %vm386_vm0, %v1837_v10, %v1839_v62  ;;  %v1929_v39 = vmul.f32 %v3702_v48, %v3428_v7 }
  0xb0   : > { %v1732_v40 = vmax.f32 %v1724_v16, 0.0  ;;  %v1861_v42 = vadd.f32 %v1838_v55, %v1801_v32  ;;  %v1862_v18 = vadd.f32 %v1840_v56, %v1802_v46  ;;  %v1898_v29 = vsel %vm448_vm1, %v1896_v21, %v1897_v50 }
  0xb1   : > { %v1739_v41 = vmin.f32 %v1731_v17, 6.0  ;;  %v1900_v47 = vsel %vm448_vm1, %v1897_v50, %v1899_v24  ;;  %v1930_v27 = vmul.f32 %v3704_v52, %v3428_v7  ;;  %v1946_v44 = vmul.f32 %v3702_v48, %v3430_v8 }
  0xb2   : > { %v1740_v53 = vmin.f32 %v1732_v40, 6.0  ;;  %v1921_v33 = vadd.f32 %v1898_v29, %v1861_v42  ;;  %v1922_v43 = vadd.f32 %v1900_v47, %v1862_v18  ;;  %v1947_v54 = vmul.f32 %v3704_v52, %v3430_v8 }
  0xb3   : > { %v1948_v32 = vmul.f32 %v3713_v57, %v3430_v8  ;;  %v1972_v46 = vrot.slane %v1946_v44, 1  ;;  %v2006_v26 = vmul.f32 %v3702_v48, %v3432_v9  ;;  %v2007_v0 = vmul.f32 %v3704_v52, %v3432_v9 }
  0xb4   : > { %v2977_v3 = vpack.c.bf16 %v1740_v53, %v1739_v41  ;;  %v1937_v19 = vadd.f32 %v1929_v39, %v1921_v33  ;;  %v1938_v31 = vadd.f32 %v1930_v27, %v1922_v43  ;;  %v1973_v1 = vrot.slane %v1947_v54, 1  ;;  %v3102_v27 = vld [vmem:[%s3424_s30 + $0x30] sm:$0xff]  }
  0xb5   : > { %v1975_v10 = vrot.slane %v1948_v32, 1  ;;  %v2008_v62 = vmul.f32 %v3713_v57, %v3432_v9  ;;  %v2032_v16 = vrot.slane %v2006_v26, 2  ;;  %v2033_v21 = vrot.slane %v2007_v0, 2  ;;  %v330_v0 = vld [vmem:[%s3424_s30 + $0x38] sm:$0x1] }
  0xb6   : > { %3115 = vst [vmem:[#allocation2 + $0x20] sm:$0xff] %v2977_v3   ;;  %v1974_v50 = vsel %vm386_vm0, %v1972_v46, %v1973_v1  ;;  %v2065_v24 = vmul.f32 %v3982_v30, %v3437_v13  ;;  %v2066_v17 = vmul.f32 %v3987_v38, %v3437_v13  ;;  %v2082_v55 = vmul.f32 %v3982_v30, %v3439_v14 }
  0xb7   : > { %v1976_v56 = vsel %vm386_vm0, %v1973_v1, %v1975_v10  ;;  %v1997_v39 = vadd.f32 %v1974_v50, %v1937_v19  ;;  %v2034_v40 = vsel %vm448_vm1, %v2032_v16, %v2033_v21  ;;  %v2035_v42 = vrot.slane %v2008_v62, 2 }
  0xb8   : > { %v1998_v18 = vadd.f32 %v1976_v56, %v1938_v31  ;;  %v2083_v29 = vmul.f32 %v3987_v38, %v3439_v14  ;;  %v2084_v41 = vmul.f32 %v3989_v51, %v3439_v14  ;;  %v2108_v47 = vrot.slane %v2082_v55, 1 }
  0xb9   : > { %v2036_v44 = vsel %vm448_vm1, %v2033_v21, %v2035_v42  ;;  %v2057_v53 = vadd.f32 %v2034_v40, %v1997_v39  ;;  %v2142_v33 = vmul.f32 %v3973_v60, %v3982_v30  ;;  %v2143_v43 = vmul.f32 %v3973_v60, %v3987_v38 }
  0xba   : > { %v2058_v54 = vadd.f32 %v2036_v44, %v1998_v18  ;;  %v2109_v32 = vrot.slane %v2083_v29, 1  ;;  %v2111_v46 = vrot.slane %v2084_v41, 1  ;;  %v2144_v26 = vmul.f32 %v3973_v60, %v3989_v51 }
  0xbb   : > { %v2073_v3 = vadd.f32 %v2065_v24, %v2057_v53  ;;  %v2168_v19 = vrot.slane %v2142_v33, 2  ;;  %v2169_v31 = vrot.slane %v2143_v43, 2  ;;  %v4057_v1 = vunpack.c.l.bf16 %v3102_v27 }
  0xbc   : > { %v2074_v10 = vadd.f32 %v2066_v17, %v2058_v54  ;;  %v2110_v62 = vsel %vm386_vm0, %v2108_v47, %v2109_v32  ;;  %v2112_v16 = vsel %vm386_vm0, %v2109_v32, %v2111_v46  ;;  %v2171_v21 = vrot.slane %v2144_v26, 2 }
  0xbd   : > { %v2877_v50 = vld [vmem:[#allocation2 + $0x20] sm:$0xff]  ;;  %v2133_v55 = vadd.f32 %v2110_v62, %v2073_v3  ;;  %v2170_v56 = vsel %vm448_vm1, %v2168_v19, %v2169_v31  ;;  %v4062_v39 = vunpack.c.h.bf16 %v3102_v27  ;;  %v4064_v40 = vunpack.c.l.bf16 %v330_v0 }
  0xbe   : > { %v2134_v42 = vadd.f32 %v2112_v16, %v2074_v10  ;;  %v2172_v24 = vsel %vm448_vm1, %v2169_v31, %v2171_v21  ;;  %v357_v18 = vmul.f32 %v3446_v22, %v3417_v4  ;;  %v358_v17 = vmul.f32 %v3448_v23, %v3417_v4  ;;  %2489 = vmatmul.bf16.gmra.mxu2 %v2877_v50 }
  0xbf   : > { %v2193_v29 = vadd.f32 %v2170_v56, %v2133_v55  ;;  %v368_v41 = vmul.f32 %v3446_v22, %v3419_v5  ;;  %v369_v47 = vmul.f32 %v3448_v23, %v3419_v5  ;;  %v370_v27 = vmul.f32 %v3419_v5, %v3458_v28 }
  0xc0   : > { %v2194_v44 = vadd.f32 %v2172_v24, %v2134_v42  ;;  %v430_v53 = vmul.f32 %v3446_v22, %v3426_v6  ;;  %v431_v33 = vmul.f32 %v3448_v23, %v3426_v6  ;;  %v432_v43 = vmul.f32 %v3426_v6, %v3458_v28 }
  0xc1   : > { %v2201_v54 = vadd.f32 %v4011_v59, %v2193_v29  ;;  %v397_v32 = vrot.slane %v368_v41, 1  ;;  %v398_v46 = vrot.slane %v369_v47, 1  ;;  %v400_v26 = vrot.slane %v370_v27, 1 }
  0xc2   : > { %v2202_v0 = vadd.f32 %v4011_v59, %v2194_v44  ;;  %v459_v3 = vrot.slane %v430_v53, 2  ;;  %v460_v19 = vrot.slane %v431_v33, 2  ;;  %v462_v31 = vrot.slane %v432_v43, 2 }
  0xc3   : > { %v2209_v10 = vmax.f32 %v2201_v54, 0.0  ;;  %v399_v62 = vsel %vm386_vm0, %v397_v32, %v398_v46  ;;  %v401_v22 = vsel %vm386_vm0, %v398_v46, %v400_v26  ;;  %v490_v23 = vmul.f32 %v3428_v7, %v3769_v34 }
  0xc4   : > { %v2210_v16 = vmax.f32 %v2202_v0, 0.0  ;;  %v419_v28 = vadd.f32 %v399_v62, %v357_v18  ;;  %v420_v21 = vadd.f32 %v401_v22, %v358_v17  ;;  %v461_v50 = vsel %vm448_vm1, %v459_v3, %v460_v19 }
  0xc5   : > { %v2217_v55 = vmin.f32 %v2209_v10, 6.0  ;;  %v463_v56 = vsel %vm448_vm1, %v460_v19, %v462_v31  ;;  %v491_v42 = vmul.f32 %v3428_v7, %v3772_v35  ;;  %v509_v24 = vmul.f32 %v3430_v8, %v3769_v34 }
  0xc6   : > { %v2218_v29 = vmin.f32 %v2210_v16, 6.0  ;;  %v481_v41 = vadd.f32 %v461_v50, %v419_v28  ;;  %v482_v47 = vadd.f32 %v463_v56, %v420_v21  ;;  %v510_v27 = vmul.f32 %v3430_v8, %v3772_v35 }
  0xc7   : > { %v511_v18 = vmul.f32 %v3430_v8, %v3775_v45  ;;  %v537_v17 = vrot.slane %v509_v24, 1  ;;  %v570_v44 = vmul.f32 %v3432_v9, %v3769_v34  ;;  %v571_v53 = vmul.f32 %v3432_v9, %v3772_v35 }
  0xc8   : > { %v3009_v33 = vpack.c.bf16 %v2218_v29, %v2217_v55  ;;  %v498_v43 = vadd.f32 %v490_v23, %v481_v41  ;;  %v499_v54 = vadd.f32 %v491_v42, %v482_v47  ;;  %v538_v32 = vrot.slane %v510_v27, 1  ;;  %v3108_v42 = vld [vmem:[%s3424_s30 + $0x60] sm:$0xff]  }
  0xc9   : > { %v540_v46 = vrot.slane %v511_v18, 1  ;;  %v572_v26 = vmul.f32 %v3432_v9, %v3775_v45  ;;  %v598_v0 = vrot.slane %v570_v44, 2  ;;  %v599_v3 = vrot.slane %v571_v53, 2  ;;  %v2733_v53 = vld [vmem:[%s3424_s30 + $0x68] sm:$0x1] }
  0xca   : > { %3120 = vst [vmem:[#allocation2 + $0x70] sm:$0xff] %v3009_v33   ;;  %v539_v19 = vsel %vm386_vm0, %v537_v17, %v538_v32  ;;  %v629_v31 = vmul.f32 %v4057_v1, %v3437_v13  ;;  %v630_v10 = vmul.f32 %v4062_v39, %v3437_v13  ;;  %v648_v62 = vmul.f32 %v4057_v1, %v3439_v14 }
  0xcb   : > { %v541_v22 = vsel %vm386_vm0, %v538_v32, %v540_v46  ;;  %v559_v23 = vadd.f32 %v539_v19, %v498_v43  ;;  %v600_v16 = vsel %vm448_vm1, %v598_v0, %v599_v3  ;;  %v601_v28 = vrot.slane %v572_v26, 2 }
  0xcc   : > { %v560_v21 = vadd.f32 %v541_v22, %v499_v54  ;;  %v649_v50 = vmul.f32 %v4062_v39, %v3439_v14  ;;  %v650_v55 = vmul.f32 %v3439_v14, %v4064_v40  ;;  %v676_v56 = vrot.slane %v648_v62, 1 }
  0xcd   : > { %v602_v24 = vsel %vm448_vm1, %v599_v3, %v601_v28  ;;  %v620_v29 = vadd.f32 %v600_v16, %v559_v23  ;;  %v709_v41 = vmul.f32 %v3973_v60, %v4057_v1  ;;  %v710_v47 = vmul.f32 %v3973_v60, %v4062_v39 }
  0xce   : > { %v621_v27 = vadd.f32 %v602_v24, %v560_v21  ;;  %v677_v18 = vrot.slane %v649_v50, 1  ;;  %v679_v17 = vrot.slane %v650_v55, 1  ;;  %v711_v44 = vmul.f32 %v3973_v60, %v4064_v40 }
  0xcf   : > { %v637_v33 = vadd.f32 %v629_v31, %v620_v29  ;;  %v737_v43 = vrot.slane %v709_v41, 2  ;;  %v738_v54 = vrot.slane %v710_v47, 2  ;;  %v4127_v32 = vunpack.c.l.bf16 %v3108_v42 }
  0xd0   : > { %v638_v46 = vadd.f32 %v630_v10, %v621_v27  ;;  %v678_v26 = vsel %vm386_vm0, %v676_v56, %v677_v18  ;;  %v680_v0 = vsel %vm386_vm0, %v677_v18, %v679_v17  ;;  %v740_v3 = vrot.slane %v711_v44, 2 }
  0xd1   : > { %v2881_v19 = vld [vmem:[#allocation2 + $0x70] sm:$0xff]  ;;  %v698_v62 = vadd.f32 %v678_v26, %v637_v33  ;;  %v739_v22 = vsel %vm448_vm1, %v737_v43, %v738_v54  ;;  %v4132_v23 = vunpack.c.h.bf16 %v3108_v42  ;;  %v4134_v16 = vunpack.c.l.bf16 %v2733_v53 }
  0xd2   : > { %v699_v28 = vadd.f32 %v680_v0, %v638_v46  ;;  %v741_v31 = vsel %vm448_vm1, %v738_v54, %v740_v3  ;;  %v847_v21 = vmul.f32 %v3497_v2, %v3417_v4  ;;  %v848_v10 = vmul.f32 %v3521_v36, %v3417_v4  ;;  %2509 = vmatmul.bf16.gmra.mxu3 %v2881_v19 }
  0xd3   : > { %v759_v50 = vadd.f32 %v739_v22, %v698_v62  ;;  %v857_v55 = vmul.f32 %v3497_v2, %v3419_v5  ;;  %v858_v56 = vmul.f32 %v3521_v36, %v3419_v5  ;;  %v859_v42 = vmul.f32 %v3554_v12, %v3419_v5 }
  0xd4   : > { %v760_v24 = vadd.f32 %v741_v31, %v699_v28  ;;  %v917_v29 = vmul.f32 %v3497_v2, %v3426_v6  ;;  %v918_v41 = vmul.f32 %v3521_v36, %v3426_v6  ;;  %v919_v47 = vmul.f32 %v3554_v12, %v3426_v6 }
  0xd5   : > { %v770_v27 = vadd.f32 %v4011_v59, %v759_v50  ;;  %v885_v18 = vrot.slane %v857_v55, 1  ;;  %v886_v17 = vrot.slane %v858_v56, 1  ;;  %v888_v44 = vrot.slane %v859_v42, 1 }
  0xd6   : > { %v771_v53 = vadd.f32 %v4011_v59, %v760_v24  ;;  %v945_v33 = vrot.slane %v917_v29, 2  ;;  %v946_v43 = vrot.slane %v918_v41, 2  ;;  %v948_v54 = vrot.slane %v919_v47, 2 }
  0xd7   : > { %v778_v46 = vmax.f32 %v770_v27, 0.0  ;;  %v887_v26 = vsel %vm386_vm0, %v885_v18, %v886_v17  ;;  %v889_v2 = vsel %vm386_vm0, %v886_v17, %v888_v44  ;;  %v975_v36 = vmul.f32 %v3839_v11, %v3428_v7 }
  0xd8   : > { %v779_v0 = vmax.f32 %v771_v53, 0.0  ;;  %v907_v12 = vadd.f32 %v887_v26, %v847_v21  ;;  %v908_v3 = vadd.f32 %v889_v2, %v848_v10  ;;  %v947_v19 = vsel %vm448_vm1, %v945_v33, %v946_v43 }
  0xd9   : > { %v786_v62 = vmin.f32 %v778_v46, 6.0  ;;  %v949_v22 = vsel %vm448_vm1, %v946_v43, %v948_v54  ;;  %v976_v28 = vmul.f32 %v3843_v20, %v3428_v7  ;;  %v993_v31 = vmul.f32 %v3839_v11, %v3430_v8 }
  0xda   : > { %v787_v50 = vmin.f32 %v779_v0, 6.0  ;;  %v967_v55 = vadd.f32 %v947_v19, %v907_v12  ;;  %v968_v56 = vadd.f32 %v949_v22, %v908_v3  ;;  %v994_v42 = vmul.f32 %v3843_v20, %v3430_v8 }
  0xdb   : > { %v995_v21 = vmul.f32 %v3845_v25, %v3430_v8  ;;  %v1021_v10 = vrot.slane %v993_v31, 1  ;;  %v1053_v24 = vmul.f32 %v3839_v11, %v3432_v9  ;;  %v1054_v29 = vmul.f32 %v3843_v20, %v3432_v9 }
  0xdc   : > { %v2918_v41 = vpack.c.bf16 %v787_v50, %v786_v62  ;;  %v983_v47 = vadd.f32 %v975_v36, %v967_v55  ;;  %v984_v27 = vadd.f32 %v976_v28, %v968_v56  ;;  %v1022_v18 = vrot.slane %v994_v42, 1  ;;  %v3114_v28 = vld [vmem:[%s3424_s30 + $0x90] sm:$0xff]  }
  0xdd   : > { %v1024_v17 = vrot.slane %v995_v21, 1  ;;  %v1055_v44 = vmul.f32 %v3845_v25, %v3432_v9  ;;  %v1081_v53 = vrot.slane %v1053_v24, 2  ;;  %v1082_v33 = vrot.slane %v1054_v29, 2  ;;  %v2751_v29 = vld [vmem:[%s3424_s30 + $0x98] sm:$0x1] }
  0xde   : > { %3104 = vst [vmem:[#allocation2 + $0x58] sm:$0xff] %v2918_v41   ;;  %v1023_v43 = vsel %vm386_vm0, %v1021_v10, %v1022_v18  ;;  %v1111_v54 = vmul.f32 %v4127_v32, %v3437_v13  ;;  %v1112_v46 = vmul.f32 %v4132_v23, %v3437_v13  ;;  %v1129_v26 = vmul.f32 %v4127_v32, %v3439_v14 }
  0xdf   : > { %v1025_v2 = vsel %vm386_vm0, %v1022_v18, %v1024_v17  ;;  %v1043_v36 = vadd.f32 %v1023_v43, %v983_v47  ;;  %v1083_v0 = vsel %vm448_vm1, %v1081_v53, %v1082_v33  ;;  %v1084_v12 = vrot.slane %v1055_v44, 2 }
  0xe0   : > { %v1044_v3 = vadd.f32 %v1025_v2, %v984_v27  ;;  %v1130_v19 = vmul.f32 %v4132_v23, %v3439_v14  ;;  %v1131_v62 = vmul.f32 %v4134_v16, %v3439_v14  ;;  %v1157_v22 = vrot.slane %v1129_v26, 1 }
  0xe1   : > { %v1085_v31 = vsel %vm448_vm1, %v1082_v33, %v1084_v12  ;;  %v1103_v50 = vadd.f32 %v1083_v0, %v1043_v36  ;;  %v1189_v55 = vmul.f32 %v3973_v60, %v4127_v32  ;;  %v1190_v56 = vmul.f32 %v3973_v60, %v4132_v23 }
  0xe2   : > { %v1104_v42 = vadd.f32 %v1085_v31, %v1044_v3  ;;  %v1158_v21 = vrot.slane %v1130_v19, 1  ;;  %v1160_v10 = vrot.slane %v1131_v62, 1  ;;  %v1191_v24 = vmul.f32 %v3973_v60, %v4134_v16 }
  0xe3   : > { %v1119_v41 = vadd.f32 %v1111_v54, %v1103_v50  ;;  %v1217_v47 = vrot.slane %v1189_v55, 2  ;;  %v1218_v27 = vrot.slane %v1190_v56, 2  ;;  %v4197_v18 = vunpack.c.l.bf16 %v3114_v28 }
  0xe4   : > { %v1120_v17 = vadd.f32 %v1112_v46, %v1104_v42  ;;  %v1159_v44 = vsel %vm386_vm0, %v1157_v22, %v1158_v21  ;;  %v1161_v53 = vsel %vm386_vm0, %v1158_v21, %v1160_v10  ;;  %v1220_v33 = vrot.slane %v1191_v24, 2 }
  0xe5   : > { %v2870_v43 = vld [vmem:[#allocation2 + $0x58] sm:$0xff]  ;;  %v1179_v26 = vadd.f32 %v1159_v44, %v1119_v41  ;;  %v1219_v2 = vsel %vm448_vm1, %v1217_v47, %v1218_v27  ;;  %v4202_v36 = vunpack.c.h.bf16 %v3114_v28  ;;  %v4204_v0 = vunpack.c.l.bf16 %v2751_v29 }
  0xe6   : > { %v1180_v12 = vadd.f32 %v1161_v53, %v1120_v17  ;;  %v1221_v54 = vsel %vm448_vm1, %v1218_v27, %v1220_v33  ;;  %v1325_v3 = vmul.f32 %v3621_v63, %v3417_v4  ;;  %v1326_v46 = vmul.f32 %v3624_v15, %v3417_v4  ;;  %2454 = vmatmul.bf16.gmra.mxu0 %v2870_v43 }
  0xe7   : > { %v1239_v19 = vadd.f32 %v1219_v2, %v1179_v26  ;;  %v1335_v62 = vmul.f32 %v3621_v63, %v3419_v5  ;;  %v1336_v22 = vmul.f32 %v3624_v15, %v3419_v5  ;;  %v1337_v28 = vmul.f32 %v3635_v37, %v3419_v5 }
  0xe8   : > { %v1240_v31 = vadd.f32 %v1221_v54, %v1180_v12  ;;  %v1395_v50 = vmul.f32 %v3621_v63, %v3426_v6  ;;  %v1396_v55 = vmul.f32 %v3624_v15, %v3426_v6  ;;  %v1397_v56 = vmul.f32 %v3635_v37, %v3426_v6 }
  0xe9   : > { %v1247_v42 = vadd.f32 %v4011_v59, %v1239_v19  ;;  %v1363_v21 = vrot.slane %v1335_v62, 1  ;;  %v1364_v10 = vrot.slane %v1336_v22, 1  ;;  %v1366_v24 = vrot.slane %v1337_v28, 1 }
  0xea   : > { %v1248_v29 = vadd.f32 %v4011_v59, %v1240_v31  ;;  %v1423_v41 = vrot.slane %v1395_v50, 2  ;;  %v1424_v47 = vrot.slane %v1396_v55, 2  ;;  %v1426_v27 = vrot.slane %v1397_v56, 2 }
  0xeb   : > { %v1255_v17 = vmax.f32 %v1247_v42, 0.0  ;;  %v1365_v63 = vsel %vm386_vm0, %v1363_v21, %v1364_v10  ;;  %v1367_v44 = vsel %vm386_vm0, %v1364_v10, %v1366_v24  ;;  %v1453_v15 = vmul.f32 %v3907_v49, %v3428_v7 }
  0xec   : > { %v1256_v37 = vmax.f32 %v1248_v29, 0.0  ;;  %v1385_v53 = vadd.f32 %v1365_v63, %v1325_v3  ;;  %v1386_v33 = vadd.f32 %v1367_v44, %v1326_v46  ;;  %v1425_v43 = vsel %vm448_vm1, %v1423_v41, %v1424_v47 }
  0xed   : > { %v1263_v26 = vmin.f32 %v1255_v17, 6.0  ;;  %v1427_v2 = vsel %vm448_vm1, %v1424_v47, %v1426_v27  ;;  %v1454_v12 = vmul.f32 %v3912_v61, %v3428_v7  ;;  %v1471_v54 = vmul.f32 %v3907_v49, %v3430_v8 }
  0xee   : > { %v1264_v19 = vmin.f32 %v1256_v37, 6.0  ;;  %v1445_v62 = vadd.f32 %v1425_v43, %v1385_v53  ;;  %v1446_v22 = vadd.f32 %v1427_v2, %v1386_v33  ;;  %v1472_v28 = vmul.f32 %v3912_v61, %v3430_v8 }
  0xef   : > { %v1473_v3 = vmul.f32 %v3914_v58, %v3430_v8  ;;  %v1499_v46 = vrot.slane %v1471_v54, 1  ;;  %v1531_v31 = vmul.f32 %v3907_v49, %v3432_v9  ;;  %v1532_v50 = vmul.f32 %v3912_v61, %v3432_v9 }
  0xf0   : > { %v2950_v55 = vpack.c.bf16 %v1264_v19, %v1263_v26  ;;  %v1461_v56 = vadd.f32 %v1453_v15, %v1445_v62  ;;  %v1462_v42 = vadd.f32 %v1454_v12, %v1446_v22  ;;  %v1500_v21 = vrot.slane %v1472_v28, 1  ;;  %v2998_v12 = vld [vmem:[%s4249_s19] sm:$0xff]  }
  0xf1   : > { %v1502_v10 = vrot.slane %v1473_v3, 1  ;;  %v1533_v24 = vmul.f32 %v3914_v58, %v3432_v9  ;;  %v1559_v29 = vrot.slane %v1531_v31, 2  ;;  %v1560_v41 = vrot.slane %v1532_v50, 2  ;;  %v1789_v50 = vld [vmem:[%s4249_s19 + $0x8] sm:$0x1] }
  0xf2   : > { %3110 = vst [vmem:[#allocation2 + $0x8] sm:$0xff] %v2950_v55   ;;  %v1501_v47 = vsel %vm386_vm0, %v1499_v46, %v1500_v21  ;;  %v1589_v27 = vmul.f32 %v4197_v18, %v3437_v13  ;;  %v1590_v17 = vmul.f32 %v4202_v36, %v3437_v13  ;;  %v1607_v63 = vmul.f32 %v4197_v18, %v3439_v14 }
  0xf3   : > { %v1503_v44 = vsel %vm386_vm0, %v1500_v21, %v1502_v10  ;;  %v1521_v15 = vadd.f32 %v1501_v47, %v1461_v56  ;;  %v1561_v37 = vsel %vm448_vm1, %v1559_v29, %v1560_v41  ;;  %v1562_v53 = vrot.slane %v1533_v24, 2 }
  0xf4   : > { %v1522_v33 = vadd.f32 %v1503_v44, %v1462_v42  ;;  %v1608_v43 = vmul.f32 %v4202_v36, %v3439_v14  ;;  %v1609_v26 = vmul.f32 %v4204_v0, %v3439_v14  ;;  %v1635_v2 = vrot.slane %v1607_v63, 1 }
  0xf5   : > { %v1563_v54 = vsel %vm448_vm1, %v1560_v41, %v1562_v53  ;;  %v1581_v19 = vadd.f32 %v1561_v37, %v1521_v15  ;;  %v1667_v62 = vmul.f32 %v3973_v60, %v4197_v18  ;;  %v1668_v22 = vmul.f32 %v3973_v60, %v4202_v36 }
  0xf6   : > { %v1582_v28 = vadd.f32 %v1563_v54, %v1522_v33  ;;  %v1636_v3 = vrot.slane %v1608_v43, 1  ;;  %v1638_v46 = vrot.slane %v1609_v26, 1  ;;  %v1669_v31 = vmul.f32 %v3973_v60, %v4204_v0 }
  0xf7   : > { %v1597_v55 = vadd.f32 %v1589_v27, %v1581_v19  ;;  %v1695_v56 = vrot.slane %v1667_v62, 2  ;;  %v1696_v42 = vrot.slane %v1668_v22, 2  ;;  %v4273_v21 = vunpack.c.l.bf16 %v2998_v12 }
  0xf8   : > { %v1598_v10 = vadd.f32 %v1590_v17, %v1582_v28  ;;  %v1637_v24 = vsel %vm386_vm0, %v1635_v2, %v1636_v3  ;;  %v1639_v29 = vsel %vm386_vm0, %v1636_v3, %v1638_v46  ;;  %v1698_v41 = vrot.slane %v1669_v31, 2 }
  0xf9   : > { %v2874_v47 = vld [vmem:[#allocation2 + $0x8] sm:$0xff]  ;;  %v1657_v63 = vadd.f32 %v1637_v24, %v1597_v55  ;;  %v1697_v44 = vsel %vm448_vm1, %v1695_v56, %v1696_v42  ;;  %v4278_v15 = vunpack.c.h.bf16 %v2998_v12  ;;  %v4280_v37 = vunpack.c.l.bf16 %v1789_v50 }
  0xfa   : > { %v1658_v53 = vadd.f32 %v1639_v29, %v1598_v10  ;;  %v1699_v27 = vsel %vm448_vm1, %v1696_v42, %v1698_v41  ;;  %v1803_v33 = vmul.f32 %v3702_v48, %v3417_v4  ;;  %v1804_v17 = vmul.f32 %v3704_v52, %v3417_v4  ;;  %2474 = vmatmul.bf16.gmra.mxu1 %v2874_v47 }
  0xfb   : > { %v1717_v43 = vadd.f32 %v1697_v44, %v1657_v63  ;;  %v1813_v26 = vmul.f32 %v3702_v48, %v3419_v5  ;;  %v1814_v2 = vmul.f32 %v3704_v52, %v3419_v5  ;;  %v1815_v12 = vmul.f32 %v3713_v57, %v3419_v5 }
  0xfc   : > { %v1718_v54 = vadd.f32 %v1699_v27, %v1658_v53  ;;  %v1873_v19 = vmul.f32 %v3702_v48, %v3426_v6  ;;  %v1874_v62 = vmul.f32 %v3704_v52, %v3426_v6  ;;  %v1875_v22 = vmul.f32 %v3713_v57, %v3426_v6 }
  0xfd   : > { %v1725_v28 = vadd.f32 %v4011_v59, %v1717_v43  ;;  %v1841_v3 = vrot.slane %v1813_v26, 1  ;;  %v1842_v46 = vrot.slane %v1814_v2, 1  ;;  %v1844_v31 = vrot.slane %v1815_v12, 1 }
  0xfe   : > { %v1726_v50 = vadd.f32 %v4011_v59, %v1718_v54  ;;  %v1901_v55 = vrot.slane %v1873_v19, 2  ;;  %v1902_v56 = vrot.slane %v1874_v62, 2  ;;  %v1904_v42 = vrot.slane %v1875_v22, 2 }
  0xff   : > { %v1733_v10 = vmax.f32 %v1725_v28, 0.0  ;;  %v1843_v24 = vsel %vm386_vm0, %v1841_v3, %v1842_v46  ;;  %v1845_v48 = vsel %vm386_vm0, %v1842_v46, %v1844_v31  ;;  %v1931_v52 = vmul.f32 %v3982_v30, %v3428_v7 }
 0x100   : > { %v1734_v29 = vmax.f32 %v1726_v50, 0.0  ;;  %v1863_v57 = vadd.f32 %v1843_v24, %v1803_v33  ;;  %v1864_v41 = vadd.f32 %v1845_v48, %v1804_v17  ;;  %v1903_v47 = vsel %vm448_vm1, %v1901_v55, %v1902_v56 }
 0x101   : > { %v1741_v63 = vmin.f32 %v1733_v10, 6.0  ;;  %v1905_v44 = vsel %vm448_vm1, %v1902_v56, %v1904_v42  ;;  %v1932_v53 = vmul.f32 %v3987_v38, %v3428_v7  ;;  %v1949_v27 = vmul.f32 %v3982_v30, %v3430_v8 }
 0x102   : > { %v1742_v43 = vmin.f32 %v1734_v29, 6.0  ;;  %v1923_v26 = vadd.f32 %v1903_v47, %v1863_v57  ;;  %v1924_v2 = vadd.f32 %v1905_v44, %v1864_v41  ;;  %v1950_v12 = vmul.f32 %v3987_v38, %v3430_v8 }
 0x103   : > { %v1951_v33 = vmul.f32 %v3989_v51, %v3430_v8  ;;  %v1977_v17 = vrot.slane %v1949_v27, 1  ;;  %v2009_v54 = vmul.f32 %v3982_v30, %v3432_v9  ;;  %v2010_v19 = vmul.f32 %v3987_v38, %v3432_v9 }
 0x104   : > { %v2982_v62 = vpack.c.bf16 %v1742_v43, %v1741_v63  ;;  %v1939_v22 = vadd.f32 %v1931_v52, %v1923_v26  ;;  %v1940_v28 = vadd.f32 %v1932_v53, %v1924_v2  ;;  %v1978_v3 = vrot.slane %v1950_v12, 1  ;;  %v331_v53 = vld [vmem:[%s3424_s30 + $0x3c] sm:$0xff]  }
 0x105   : > { %v1980_v46 = vrot.slane %v1951_v33, 1  ;;  %v2011_v31 = vmul.f32 %v3989_v51, %v3432_v9  ;;  %v2037_v50 = vrot.slane %v2009_v54, 2  ;;  %v2038_v55 = vrot.slane %v2010_v19, 2  ;;  %v4343_v19 = vld [vmem:[%s3424_s30 + $0x44] sm:$0x1] }
 0x106   : > { %3116 = vst [vmem:[#allocation2 + $0x10] sm:$0xff] %v2982_v62   ;;  %v1979_v56 = vsel %vm386_vm0, %v1977_v17, %v1978_v3  ;;  %v2067_v42 = vmul.f32 %v4273_v21, %v3437_v13  ;;  %v2068_v10 = vmul.f32 %v4278_v15, %v3437_v13  ;;  %v2085_v24 = vmul.f32 %v4273_v21, %v3439_v14 }
 0x107   : > { %v1981_v48 = vsel %vm386_vm0, %v1978_v3, %v1980_v46  ;;  %v1999_v52 = vadd.f32 %v1979_v56, %v1939_v22  ;;  %v2039_v29 = vsel %vm448_vm1, %v2037_v50, %v2038_v55  ;;  %v2040_v57 = vrot.slane %v2011_v31, 2 }
 0x108   : > { %v2000_v41 = vadd.f32 %v1981_v48, %v1940_v28  ;;  %v2086_v47 = vmul.f32 %v4278_v15, %v3439_v14  ;;  %v2087_v63 = vmul.f32 %v4280_v37, %v3439_v14  ;;  %v2113_v44 = vrot.slane %v2085_v24, 1 }
 0x109   : > { %v2041_v27 = vsel %vm448_vm1, %v2038_v55, %v2040_v57  ;;  %v2059_v43 = vadd.f32 %v2039_v29, %v1999_v52  ;;  %v2145_v26 = vmul.f32 %v3973_v60, %v4273_v21  ;;  %v2146_v2 = vmul.f32 %v3973_v60, %v4278_v15 }
 0x10a   : > { %v2060_v12 = vadd.f32 %v2041_v27, %v2000_v41  ;;  %v2114_v33 = vrot.slane %v2086_v47, 1  ;;  %v2116_v17 = vrot.slane %v2087_v63, 1  ;;  %v2147_v54 = vmul.f32 %v3973_v60, %v4280_v37 }
 0x10b   : > { %v2075_v62 = vadd.f32 %v2067_v42, %v2059_v43  ;;  %v2173_v22 = vrot.slane %v2145_v26, 2  ;;  %v2174_v28 = vrot.slane %v2146_v2, 2  ;;  %v4345_v3 = vunpack.c.l.bf16 %v331_v53 }
 0x10c   : > { %v2076_v46 = vadd.f32 %v2068_v10, %v2060_v12  ;;  %v2115_v31 = vsel %vm386_vm0, %v2113_v44, %v2114_v33  ;;  %v2117_v50 = vsel %vm386_vm0, %v2114_v33, %v2116_v17  ;;  %v2176_v55 = vrot.slane %v2147_v54, 2 }
 0x10d   : > { %v2878_v56 = vld [vmem:[#allocation2 + $0x10] sm:$0xff]  ;;  %v2135_v24 = vadd.f32 %v2115_v31, %v2075_v62  ;;  %v2175_v48 = vsel %vm448_vm1, %v2173_v22, %v2174_v28  ;;  %v4350_v52 = vunpack.c.h.bf16 %v331_v53  ;;  %v351_v60 = vunpack.c.l.bf16 %v4343_v19 }
 0x10e   : > { %v2136_v29 = vadd.f32 %v2117_v50, %v2076_v46  ;;  %v2177_v42 = vsel %vm448_vm1, %v2174_v28, %v2176_v55  ;;  %v359_v57 = vmul.f32 %v3417_v4, %v3769_v34  ;;  %v360_v10 = vmul.f32 %v3417_v4, %v3772_v35  ;;  %2494 = vmatmul.bf16.gmra.mxu2 %v2878_v56 }
 0x10f   : > { %v2195_v41 = vadd.f32 %v2175_v48, %v2135_v24  ;;  %v371_v47 = vmul.f32 %v3419_v5, %v3769_v34  ;;  %v372_v63 = vmul.f32 %v3419_v5, %v3772_v35  ;;  %v373_v44 = vmul.f32 %v3419_v5, %v3775_v45 }
 0x110   : > { %v2196_v53 = vadd.f32 %v2177_v42, %v2136_v29  ;;  %v433_v27 = vmul.f32 %v3426_v6, %v3769_v34  ;;  %v434_v43 = vmul.f32 %v3426_v6, %v3772_v35  ;;  %v435_v26 = vmul.f32 %v3426_v6, %v3775_v45 }
 0x111   : > { %v2203_v2 = vadd.f32 %v4011_v59, %v2195_v41  ;;  %v402_v12 = vrot.slane %v371_v47, 1  ;;  %v403_v33 = vrot.slane %v372_v63, 1  ;;  %v405_v17 = vrot.slane %v373_v44, 1 }
 0x112   : > { %v2204_v54 = vadd.f32 %v4011_v59, %v2196_v53  ;;  %v464_v62 = vrot.slane %v433_v27, 2  ;;  %v465_v22 = vrot.slane %v434_v43, 2  ;;  %v467_v28 = vrot.slane %v435_v26, 2 }
 0x113   : > { %v2211_v46 = vmax.f32 %v2203_v2, 0.0  ;;  %v404_v31 = vsel %vm386_vm0, %v402_v12, %v403_v33  ;;  %v406_v34 = vsel %vm386_vm0, %v403_v33, %v405_v17  ;;  %v492_v35 = vmul.f32 %v4057_v1, %v3428_v7 }
 0x114   : > { %v2212_v50 = vmax.f32 %v2204_v54, 0.0  ;;  %v421_v45 = vadd.f32 %v404_v31, %v359_v57  ;;  %v422_v55 = vadd.f32 %v406_v34, %v360_v10  ;;  %v466_v56 = vsel %vm448_vm1, %v464_v62, %v465_v22 }
 0x115   : > { %v2219_v24 = vmin.f32 %v2211_v46, 6.0  ;;  %v468_v48 = vsel %vm448_vm1, %v465_v22, %v467_v28  ;;  %v493_v59 = vmul.f32 %v4062_v39, %v3428_v7  ;;  %v512_v29 = vmul.f32 %v4057_v1, %v3430_v8 }
 0x116   : > { %v2220_v42 = vmin.f32 %v2212_v50, 6.0  ;;  %v483_v41 = vadd.f32 %v466_v56, %v421_v45  ;;  %v484_v47 = vadd.f32 %v468_v48, %v422_v55  ;;  %v513_v63 = vmul.f32 %v4062_v39, %v3430_v8  ;;  %v2734_v55 = vld [vmem:[%s3424_s30 + $0x6c] sm:$0xff]   ;;  %v4411_v48 = vld [vmem:[%s4748_s2 + $0x8] ss:$0 sm:$0xff] }
 0x117   : > { %v514_v57 = vmul.f32 %v3430_v8, %v4064_v40  ;;  %v542_v10 = vrot.slane %v512_v29, 1  ;;  %v573_v44 = vmul.f32 %v4057_v1, %v3432_v9  ;;  %v574_v53 = vmul.f32 %v4062_v39, %v3432_v9 }
 0x118   : > { %v3014_v27 = vpack.c.bf16 %v2220_v42, %v2219_v24  ;;  %v500_v43 = vadd.f32 %v492_v35, %v483_v41  ;;  %v501_v26 = vadd.f32 %v493_v59, %v484_v47  ;;  %v543_v2 = vrot.slane %v513_v63, 1 }
 0x119   : > { %v545_v12 = vrot.slane %v514_v57, 1  ;;  %v575_v33 = vmul.f32 %v3432_v9, %v4064_v40  ;;  %v603_v17 = vrot.slane %v573_v44, 2  ;;  %v604_v54 = vrot.slane %v574_v53, 2  ;;  %v4421_v57 = vld [vmem:[%s3424_s30 + $0x74] sm:$0x1] }
 0x11a   : > { %3121 = vst [vmem:[#allocation2 + $0x78] sm:$0xff] %v3014_v27   ;;  %v544_v62 = vsel %vm386_vm0, %v542_v10, %v543_v2  ;;  %v631_v1 = vmul.f32 %v3437_v13, %v4345_v3  ;;  %v632_v39 = vmul.f32 %v3437_v13, %v4350_v52  ;;  %v651_v22 = vmul.f32 %v3439_v14, %v4345_v3 }
 0x11b   : > { %v546_v28 = vsel %vm386_vm0, %v543_v2, %v545_v12  ;;  %v561_v46 = vadd.f32 %v544_v62, %v500_v43  ;;  %v605_v40 = vsel %vm448_vm1, %v603_v17, %v604_v54  ;;  %v606_v31 = vrot.slane %v575_v33, 2 }
 0x11c   : > { %v562_v34 = vadd.f32 %v546_v28, %v501_v26  ;;  %v652_v35 = vmul.f32 %v3439_v14, %v4350_v52  ;;  %v653_v50 = vmul.f32 %v3439_v14, %v351_v60  ;;  %v681_v45 = vrot.slane %v651_v22, 1 }
 0x11d   : > { %v607_v56 = vsel %vm448_vm1, %v604_v54, %v606_v31  ;;  %v622_v24 = vadd.f32 %v605_v40, %v561_v46  ;;  %v712_v59 = vmul.f32 %v4411_v48, %v4345_v3  ;;  %v713_v29 = vmul.f32 %v4411_v48, %v4350_v52 }
 0x11e   : > { %v623_v42 = vadd.f32 %v607_v56, %v562_v34  ;;  %v682_v41 = vrot.slane %v652_v35, 1  ;;  %v684_v47 = vrot.slane %v653_v50, 1  ;;  %v714_v63 = vmul.f32 %v4411_v48, %v351_v60  ;;  %v4451_v50 = vld [vmem:[%s4749_s3] ss:$0 sm:$0xff] }
 0x11f   : > { %v639_v10 = vadd.f32 %v631_v1, %v622_v24  ;;  %v742_v44 = vrot.slane %v712_v59, 2  ;;  %v743_v53 = vrot.slane %v713_v29, 2  ;;  %v4423_v27 = vunpack.c.l.bf16 %v2734_v55 }
 0x120   : > { %v640_v43 = vadd.f32 %v632_v39, %v623_v42  ;;  %v683_v3 = vsel %vm386_vm0, %v681_v45, %v682_v41  ;;  %v685_v26 = vsel %vm386_vm0, %v682_v41, %v684_v47  ;;  %v745_v52 = vrot.slane %v714_v63, 2 }
 0x121   : > { %v2882_v2 = vld [vmem:[#allocation2 + $0x78] sm:$0xff]  ;;  %v700_v12 = vadd.f32 %v683_v3, %v639_v10  ;;  %v744_v33 = vsel %vm448_vm1, %v742_v44, %v743_v53  ;;  %v4428_v19 = vunpack.c.h.bf16 %v2734_v55  ;;  %v842_v60 = vunpack.c.l.bf16 %v4421_v57 }
 0x122   : > { %v701_v17 = vadd.f32 %v685_v26, %v640_v43  ;;  %v746_v54 = vsel %vm448_vm1, %v743_v53, %v745_v52  ;;  %v849_v62 = vmul.f32 %v3839_v11, %v3417_v4  ;;  %v850_v1 = vmul.f32 %v3843_v20, %v3417_v4  ;;  %2514 = vmatmul.bf16.gmra.mxu3 %v2882_v2 }
 0x123   : > { %v761_v39 = vadd.f32 %v744_v33, %v700_v12  ;;  %v860_v22 = vmul.f32 %v3839_v11, %v3419_v5  ;;  %v861_v28 = vmul.f32 %v3843_v20, %v3419_v5  ;;  %v862_v46 = vmul.f32 %v3845_v25, %v3419_v5 }
 0x124   : > { %v762_v40 = vadd.f32 %v746_v54, %v701_v17  ;;  %v920_v31 = vmul.f32 %v3839_v11, %v3426_v6  ;;  %v921_v34 = vmul.f32 %v3843_v20, %v3426_v6  ;;  %v922_v35 = vmul.f32 %v3845_v25, %v3426_v6 }
 0x125   : > { %v772_v45 = vadd.f32 %v4451_v50, %v761_v39  ;;  %v890_v55 = vrot.slane %v860_v22, 1  ;;  %v891_v56 = vrot.slane %v861_v28, 1  ;;  %v893_v24 = vrot.slane %v862_v46, 1 }
 0x126   : > { %v773_v59 = vadd.f32 %v4451_v50, %v762_v40  ;;  %v950_v29 = vrot.slane %v920_v31, 2  ;;  %v951_v11 = vrot.slane %v921_v34, 2  ;;  %v953_v42 = vrot.slane %v922_v35, 2 }
 0x127   : > { %v780_v41 = vmax.f32 %v772_v45, 0.0  ;;  %v892_v20 = vsel %vm386_vm0, %v890_v55, %v891_v56  ;;  %v894_v25 = vsel %vm386_vm0, %v891_v56, %v893_v24  ;;  %v977_v47 = vmul.f32 %v4127_v32, %v3428_v7 }
 0x128   : > { %v781_v63 = vmax.f32 %v773_v59, 0.0  ;;  %v909_v10 = vadd.f32 %v892_v20, %v849_v62  ;;  %v910_v44 = vadd.f32 %v894_v25, %v850_v1  ;;  %v952_v53 = vsel %vm448_vm1, %v950_v29, %v951_v11  ;;  %v2752_v25 = vld [vmem:[%s3424_s30 + $0x9c] sm:$0xff]  }
 0x129   : > { %v788_v43 = vmin.f32 %v780_v41, 6.0  ;;  %v954_v3 = vsel %vm448_vm1, %v951_v11, %v953_v42  ;;  %v978_v26 = vmul.f32 %v4132_v23, %v3428_v7  ;;  %v996_v52 = vmul.f32 %v4127_v32, %v3430_v8 }
 0x12a   : > { %v789_v2 = vmin.f32 %v781_v63, 6.0  ;;  %v969_v12 = vadd.f32 %v952_v53, %v909_v10  ;;  %v970_v33 = vadd.f32 %v954_v3, %v910_v44  ;;  %v997_v17 = vmul.f32 %v4132_v23, %v3430_v8 }
 0x12b   : > { %v998_v54 = vmul.f32 %v4134_v16, %v3430_v8  ;;  %v1026_v62 = vrot.slane %v996_v52, 1  ;;  %v1056_v1 = vmul.f32 %v4127_v32, %v3432_v9  ;;  %v1057_v39 = vmul.f32 %v4132_v23, %v3432_v9  ;;  %v4499_v52 = vld [vmem:[%s3424_s30 + $0xa4] sm:$0x1] }
 0x12c   : > { %v2923_v22 = vpack.c.bf16 %v789_v2, %v788_v43  ;;  %v985_v28 = vadd.f32 %v977_v47, %v969_v12  ;;  %v986_v46 = vadd.f32 %v978_v26, %v970_v33  ;;  %v1027_v40 = vrot.slane %v997_v17, 1 }
 0x12d   : > { %v1029_v31 = vrot.slane %v998_v54, 1  ;;  %v1058_v34 = vmul.f32 %v4134_v16, %v3432_v9  ;;  %v1086_v35 = vrot.slane %v1056_v1, 2  ;;  %v1087_v45 = vrot.slane %v1057_v39, 2 }
 0x12e   : > { %3105 = vst [vmem:[#allocation2 + $0x18] sm:$0xff] %v2923_v22   ;;  %v1028_v55 = vsel %vm386_vm0, %v1026_v62, %v1027_v40  ;;  %v1113_v32 = vmul.f32 %v4423_v27, %v3437_v13  ;;  %v1114_v23 = vmul.f32 %v4428_v19, %v3437_v13  ;;  %v1132_v56 = vmul.f32 %v4423_v27, %v3439_v14 }
 0x12f   : > { %v1030_v24 = vsel %vm386_vm0, %v1027_v40, %v1029_v31  ;;  %v1045_v59 = vadd.f32 %v1028_v55, %v985_v28  ;;  %v1088_v16 = vsel %vm448_vm1, %v1086_v35, %v1087_v45  ;;  %v1089_v29 = vrot.slane %v1058_v34, 2 }
 0x130   : > { %v1046_v11 = vadd.f32 %v1030_v24, %v986_v46  ;;  %v1133_v42 = vmul.f32 %v4428_v19, %v3439_v14  ;;  %v1134_v41 = vmul.f32 %v842_v60, %v3439_v14  ;;  %v1162_v20 = vrot.slane %v1132_v56, 1 }
 0x131   : > { %v1090_v47 = vsel %vm448_vm1, %v1087_v45, %v1089_v29  ;;  %v1105_v63 = vadd.f32 %v1088_v16, %v1045_v59  ;;  %v1192_v10 = vmul.f32 %v4411_v48, %v4423_v27  ;;  %v1193_v44 = vmul.f32 %v4411_v48, %v4428_v19 }
 0x132   : > { %v1106_v53 = vadd.f32 %v1090_v47, %v1046_v11  ;;  %v1163_v43 = vrot.slane %v1133_v42, 1  ;;  %v1165_v3 = vrot.slane %v1134_v41, 1  ;;  %v1194_v26 = vmul.f32 %v4411_v48, %v842_v60 }
 0x133   : > { %v1121_v2 = vadd.f32 %v1113_v32, %v1105_v63  ;;  %v1222_v12 = vrot.slane %v1192_v10, 2  ;;  %v1223_v33 = vrot.slane %v1193_v44, 2  ;;  %v4501_v17 = vunpack.c.l.bf16 %v2752_v25 }
 0x134   : > { %v1122_v54 = vadd.f32 %v1114_v23, %v1106_v53  ;;  %v1164_v27 = vsel %vm386_vm0, %v1162_v20, %v1163_v43  ;;  %v1166_v62 = vsel %vm386_vm0, %v1163_v43, %v1165_v3  ;;  %v1225_v19 = vrot.slane %v1194_v26, 2 }
 0x135   : > { %v2871_v1 = vld [vmem:[#allocation2 + $0x18] sm:$0xff]  ;;  %v1181_v39 = vadd.f32 %v1164_v27, %v1121_v2  ;;  %v1224_v22 = vsel %vm448_vm1, %v1222_v12, %v1223_v33  ;;  %v4506_v57 = vunpack.c.h.bf16 %v2752_v25  ;;  %v1320_v60 = vunpack.c.l.bf16 %v4499_v52 }
 0x136   : > { %v1182_v28 = vadd.f32 %v1166_v62, %v1122_v54  ;;  %v1226_v46 = vsel %vm448_vm1, %v1223_v33, %v1225_v19  ;;  %v1327_v40 = vmul.f32 %v3907_v49, %v3417_v4  ;;  %v1328_v31 = vmul.f32 %v3912_v61, %v3417_v4  ;;  %2459 = vmatmul.bf16.gmra.mxu0 %v2871_v1 }
 0x137   : > { %v1241_v34 = vadd.f32 %v1224_v22, %v1181_v39  ;;  %v1338_v35 = vmul.f32 %v3907_v49, %v3419_v5  ;;  %v1339_v45 = vmul.f32 %v3912_v61, %v3419_v5  ;;  %v1340_v55 = vmul.f32 %v3914_v58, %v3419_v5 }
 0x138   : > { %v1242_v32 = vadd.f32 %v1226_v46, %v1182_v28  ;;  %v1398_v23 = vmul.f32 %v3907_v49, %v3426_v6  ;;  %v1399_v56 = vmul.f32 %v3912_v61, %v3426_v6  ;;  %v1400_v24 = vmul.f32 %v3914_v58, %v3426_v6 }
 0x139   : > { %v1249_v59 = vadd.f32 %v4451_v50, %v1241_v34  ;;  %v1368_v16 = vrot.slane %v1338_v35, 1  ;;  %v1369_v29 = vrot.slane %v1339_v45, 1  ;;  %v1371_v11 = vrot.slane %v1340_v55, 1 }
 0x13a   : > { %v1250_v42 = vadd.f32 %v4451_v50, %v1242_v32  ;;  %v1428_v41 = vrot.slane %v1398_v23, 2  ;;  %v1429_v20 = vrot.slane %v1399_v56, 2  ;;  %v1431_v25 = vrot.slane %v1400_v24, 2 }
 0x13b   : > { %v1257_v47 = vmax.f32 %v1249_v59, 0.0  ;;  %v1370_v63 = vsel %vm386_vm0, %v1368_v16, %v1369_v29  ;;  %v1372_v49 = vsel %vm386_vm0, %v1369_v29, %v1371_v11  ;;  %v1455_v61 = vmul.f32 %v4197_v18, %v3428_v7 }
 0x13c   : > { %v1258_v10 = vmax.f32 %v1250_v42, 0.0  ;;  %v1387_v58 = vadd.f32 %v1370_v63, %v1327_v40  ;;  %v1388_v44 = vadd.f32 %v1372_v49, %v1328_v31  ;;  %v1430_v53 = vsel %vm448_vm1, %v1428_v41, %v1429_v20  ;;  %v1790_v42 = vld [vmem:[%s4249_s19 + $0xc] sm:$0xff]  }
 0x13d   : > { %v1265_v43 = vmin.f32 %v1257_v47, 6.0  ;;  %v1432_v3 = vsel %vm448_vm1, %v1429_v20, %v1431_v25  ;;  %v1456_v26 = vmul.f32 %v4202_v36, %v3428_v7  ;;  %v1474_v2 = vmul.f32 %v4197_v18, %v3430_v8 }
 0x13e   : > { %v1266_v12 = vmin.f32 %v1258_v10, 6.0  ;;  %v1447_v33 = vadd.f32 %v1430_v53, %v1387_v58  ;;  %v1448_v54 = vadd.f32 %v1432_v3, %v1388_v44  ;;  %v1475_v27 = vmul.f32 %v4202_v36, %v3430_v8  ;;  %v4572_v58 = vld [vmem:[%s4249_s19 + $0x14] sm:$0x1]  ;;  %s2605_s19 = sshll.u32 %s4665_s14, 4  ;;  %s2606_s19 = int_to_ptr.vmem [resolvable:$true] %s2605_s19 }
 0x13f   : > { %v1476_v62 = vmul.f32 %v4204_v0, %v3430_v8  ;;  %v1504_v19 = vrot.slane %v1474_v2, 1  ;;  %v1534_v1 = vmul.f32 %v4197_v18, %v3432_v9  ;;  %v1535_v39 = vmul.f32 %v4202_v36, %v3432_v9 }
 0x140   : > { %v2955_v22 = vpack.c.bf16 %v1266_v12, %v1265_v43  ;;  %v1463_v28 = vadd.f32 %v1455_v61, %v1447_v33  ;;  %v1464_v46 = vadd.f32 %v1456_v26, %v1448_v54  ;;  %v1505_v40 = vrot.slane %v1475_v27, 1 }
 0x141   : > { %v1507_v31 = vrot.slane %v1476_v62, 1  ;;  %v1536_v34 = vmul.f32 %v4204_v0, %v3432_v9  ;;  %v1564_v35 = vrot.slane %v1534_v1, 2  ;;  %v1565_v45 = vrot.slane %v1535_v39, 2 }
 0x142   : > { %3111 = vst [vmem:[#allocation2 + $0x48] sm:$0xff] %v2955_v22   ;;  %v1506_v55 = vsel %vm386_vm0, %v1504_v19, %v1505_v40  ;;  %v1591_v18 = vmul.f32 %v4501_v17, %v3437_v13  ;;  %v1592_v36 = vmul.f32 %v4506_v57, %v3437_v13  ;;  %v1610_v32 = vmul.f32 %v4501_v17, %v3439_v14 }
 0x143   : > { %v1508_v23 = vsel %vm386_vm0, %v1505_v40, %v1507_v31  ;;  %v1523_v56 = vadd.f32 %v1506_v55, %v1463_v28  ;;  %v1566_v0 = vsel %vm448_vm1, %v1564_v35, %v1565_v45  ;;  %v1567_v24 = vrot.slane %v1536_v34, 2 }
 0x144   : > { %v1524_v59 = vadd.f32 %v1508_v23, %v1464_v46  ;;  %v1611_v16 = vmul.f32 %v4506_v57, %v3439_v14  ;;  %v1612_v29 = vmul.f32 %v1320_v60, %v3439_v14  ;;  %v1640_v11 = vrot.slane %v1610_v32, 1 }
 0x145   : > { %v1568_v41 = vsel %vm448_vm1, %v1565_v45, %v1567_v24  ;;  %v1583_v20 = vadd.f32 %v1566_v0, %v1523_v56  ;;  %v1670_v25 = vmul.f32 %v4411_v48, %v4501_v17  ;;  %v1671_v47 = vmul.f32 %v4411_v48, %v4506_v57 }
 0x146   : > { %v1584_v63 = vadd.f32 %v1568_v41, %v1524_v59  ;;  %v1641_v49 = vrot.slane %v1611_v16, 1  ;;  %v1643_v61 = vrot.slane %v1612_v29, 1  ;;  %v1672_v10 = vmul.f32 %v4411_v48, %v1320_v60 }
 0x147   : > { %v1599_v44 = vadd.f32 %v1591_v18, %v1583_v20  ;;  %v1700_v53 = vrot.slane %v1670_v25, 2  ;;  %v1701_v43 = vrot.slane %v1671_v47, 2  ;;  %v4574_v3 = vunpack.c.l.bf16 %v1790_v42 }
 0x148   : > { %v1600_v26 = vadd.f32 %v1592_v36, %v1584_v63  ;;  %v1642_v17 = vsel %vm386_vm0, %v1640_v11, %v1641_v49  ;;  %v1644_v2 = vsel %vm386_vm0, %v1641_v49, %v1643_v61  ;;  %v1703_v57 = vrot.slane %v1672_v10, 2 }
 0x149   : > { %v2875_v12 = vld [vmem:[#allocation2 + $0x48] sm:$0xff]  ;;  %v1659_v33 = vadd.f32 %v1642_v17, %v1599_v44  ;;  %v1702_v54 = vsel %vm448_vm1, %v1700_v53, %v1701_v43  ;;  %v4579_v52 = vunpack.c.h.bf16 %v1790_v42  ;;  %v1798_v60 = vunpack.c.l.bf16 %v4572_v58  ;;  %v2465_v44 = vpop.f32.mrf.mxu1 }
 0x14a   : > { %v1660_v27 = vadd.f32 %v1644_v2, %v1600_v26  ;;  %v1704_v62 = vsel %vm448_vm1, %v1701_v43, %v1703_v57  ;;  %v1805_v19 = vmul.f32 %v3982_v30, %v3417_v4  ;;  %v1806_v1 = vmul.f32 %v3987_v38, %v3417_v4  ;;  %2479 = vmatmul.bf16.gmra.mxu1 %v2875_v12  ;;  %v2485_v2 = vpop.f32.mrf.mxu2  ;;  %v2505_v57 = vpop.f32.mrf.mxu3 }
 0x14b   : > { %v1719_v39 = vadd.f32 %v1702_v54, %v1659_v33  ;;  %v1816_v22 = vmul.f32 %v3982_v30, %v3419_v5  ;;  %v1817_v28 = vmul.f32 %v3987_v38, %v3419_v5  ;;  %v1818_v46 = vmul.f32 %v3989_v51, %v3419_v5 }
 0x14c   : > { %v1720_v40 = vadd.f32 %v1704_v62, %v1660_v27  ;;  %v1876_v31 = vmul.f32 %v3982_v30, %v3426_v6  ;;  %v1877_v34 = vmul.f32 %v3987_v38, %v3426_v6  ;;  %v1878_v4 = vmul.f32 %v3989_v51, %v3426_v6 }
 0x14d   : > { %v1727_v35 = vadd.f32 %v4451_v50, %v1719_v39  ;;  %v1846_v45 = vrot.slane %v1816_v22, 1  ;;  %v1847_v55 = vrot.slane %v1817_v28, 1  ;;  %v1849_v18 = vrot.slane %v1818_v46, 1  ;;  %v4633_v39 = vld [vmem:[%s4751_s5] ss:$0 sm:$0xff] }
 0x14e   : > { %v1728_v36 = vadd.f32 %v4451_v50, %v1720_v40  ;;  %v1906_v32 = vrot.slane %v1876_v31, 2  ;;  %v1907_v23 = vrot.slane %v1877_v34, 2  ;;  %v1909_v5 = vrot.slane %v1878_v4, 2 }
 0x14f   : > { %v1735_v56 = vmax.f32 %v1727_v35, 0.0  ;;  %v1848_v0 = vsel %vm386_vm0, %v1846_v45, %v1847_v55  ;;  %v1850_v30 = vsel %vm386_vm0, %v1847_v55, %v1849_v18  ;;  %v1933_v38 = vmul.f32 %v4273_v21, %v3428_v7 }
 0x150   : > { %v1736_v24 = vmax.f32 %v1728_v36, 0.0  ;;  %v1865_v6 = vadd.f32 %v1848_v0, %v1805_v19  ;;  %v1866_v51 = vadd.f32 %v1850_v30, %v1806_v1  ;;  %v1908_v59 = vsel %vm448_vm1, %v1906_v32, %v1907_v23 }
 0x151   : > { %v1743_v16 = vmin.f32 %v1735_v56, 6.0  ;;  %v1910_v29 = vsel %vm448_vm1, %v1907_v23, %v1909_v5  ;;  %v1934_v11 = vmul.f32 %v4278_v15, %v3428_v7  ;;  %v1952_v42 = vmul.f32 %v4273_v21, %v3430_v8  ;;  %v2445_v7 = vpop.f32.mrf.mxu0  ;;  %v2467_v56 = vpop.f32.mrf.mxu1 }
 0x152   : > { %v1744_v41 = vmin.f32 %v1736_v24, 6.0  ;;  %v1925_v20 = vadd.f32 %v1908_v59, %v1865_v6  ;;  %v1926_v25 = vadd.f32 %v1910_v29, %v1866_v51  ;;  %v1953_v47 = vmul.f32 %v4278_v15, %v3430_v8  ;;  %v2507_v24 = vpop.f32.mrf.mxu3 }
 0x153   : > { %v1954_v63 = vmul.f32 %v4280_v37, %v3430_v8  ;;  %v1982_v49 = vrot.slane %v1952_v42, 1  ;;  %v2012_v61 = vmul.f32 %v4273_v21, %v3432_v9  ;;  %v2013_v10 = vmul.f32 %v4278_v15, %v3432_v9 }
 0x154   : > { %v2987_v53 = vpack.c.bf16 %v1744_v41, %v1743_v16  ;;  %v1941_v43 = vadd.f32 %v1933_v38, %v1925_v20  ;;  %v1942_v26 = vadd.f32 %v1934_v11, %v1926_v25  ;;  %v1983_v17 = vrot.slane %v1953_v47, 1  ;;  %v2487_v38 = vpop.f32.mrf.mxu2 }
 0x155   : > { %v1985_v12 = vrot.slane %v1954_v63, 1  ;;  %v2014_v33 = vmul.f32 %v4280_v37, %v3432_v9  ;;  %v2042_v8 = vrot.slane %v2012_v61, 2  ;;  %v2043_v54 = vrot.slane %v2013_v10, 2 }
 0x156   : > { %3117 = vst [vmem:[#allocation2 + $0x38] sm:$0xff] %v2987_v53   ;;  %v1984_v21 = vsel %vm386_vm0, %v1982_v49, %v1983_v17  ;;  %v2069_v15 = vmul.f32 %v4574_v3, %v3437_v13  ;;  %v2070_v27 = vmul.f32 %v4579_v52, %v3437_v13  ;;  %v2088_v62 = vmul.f32 %v4574_v3, %v3439_v14 }
 0x157   : > { %v1986_v19 = vsel %vm386_vm0, %v1983_v17, %v1985_v12  ;;  %v2001_v1 = vadd.f32 %v1984_v21, %v1941_v43  ;;  %v2044_v9 = vsel %vm448_vm1, %v2042_v8, %v2043_v54  ;;  %v2045_v37 = vrot.slane %v2014_v33, 2 }
 0x158   : > { %v2002_v22 = vadd.f32 %v1986_v19, %v1942_v26  ;;  %v2089_v28 = vmul.f32 %v4579_v52, %v3439_v14  ;;  %v2090_v13 = vmul.f32 %v1798_v60, %v3439_v14  ;;  %v2118_v46 = vrot.slane %v2088_v62, 1 }
 0x159   : > { %v2046_v40 = vsel %vm448_vm1, %v2043_v54, %v2045_v37  ;;  %v2061_v31 = vadd.f32 %v2044_v9, %v2001_v1  ;;  %v2148_v34 = vmul.f32 %v4411_v48, %v4574_v3  ;;  %v2149_v4 = vmul.f32 %v4411_v48, %v4579_v52  ;;  %v2447_v5 = vpop.f32.mrf.mxu0  ;;  %v2470_v26 = vpop.f32.mrf.mxu1 }
 0x15a   : > { %v2062_v35 = vadd.f32 %v2046_v40, %v2002_v22  ;;  %v2119_v45 = vrot.slane %v2089_v28, 1  ;;  %v2121_v55 = vrot.slane %v2090_v13, 1  ;;  %v2150_v18 = vmul.f32 %v4411_v48, %v1798_v60 }
 0x15b   : > { %v2077_v14 = vadd.f32 %v2069_v15, %v2061_v31  ;;  %v2178_v36 = vrot.slane %v2148_v34, 2  ;;  %v2179_v32 = vrot.slane %v2149_v4, 2  ;;  %v2446_v23 = vadd.f32 %v4633_v39, %v2445_v7 }
 0x15c   : > { %v2078_v3 = vadd.f32 %v2070_v27, %v2062_v35  ;;  %v2120_v0 = vsel %vm386_vm0, %v2118_v46, %v2119_v45  ;;  %v2122_v52 = vsel %vm386_vm0, %v2119_v45, %v2121_v55  ;;  %v2181_v30 = vrot.slane %v2150_v18, 2 }
 0x15d   : > { %v2879_v58 = vld [vmem:[#allocation2 + $0x38] sm:$0xff]  ;;  %v2137_v6 = vadd.f32 %v2120_v0, %v2077_v14  ;;  %v2180_v48 = vsel %vm448_vm1, %v2178_v36, %v2179_v32  ;;  %v2466_v60 = vadd.f32 %v4633_v39, %v2465_v44  ;;  %v2486_v51 = vadd.f32 %v4633_v39, %v2485_v2  ;;  %v2490_v2 = vpop.f32.mrf.mxu2 }
 0x15e   : > { %v2138_v59 = vadd.f32 %v2122_v52, %v2078_v3  ;;  %v2182_v16 = vsel %vm448_vm1, %v2179_v32, %v2181_v30  ;;  %v2506_v29 = vadd.f32 %v4633_v39, %v2505_v57  ;;  %v2448_v11 = vadd.f32 %v4633_v39, %v2447_v5  ;;  %2499 = vmatmul.bf16.gmra.mxu2 %v2879_v58  ;;  %v2510_v57 = vpop.f32.mrf.mxu3 }
 0x15f   : > { %v2197_v42 = vadd.f32 %v2180_v48, %v2137_v6  ;;  %v2468_v41 = vadd.f32 %v4633_v39, %v2467_v56  ;;  %v2488_v20 = vadd.f32 %v4633_v39, %v2487_v38  ;;  %v2508_v25 = vadd.f32 %v4633_v39, %v2507_v24 }
 0x160   : > { %v2198_v47 = vadd.f32 %v2182_v16, %v2138_v59  ;;  %v3024_v63 = vpack.c.bf16 %v2448_v11, %v2446_v23  ;;  %v2471_v15 = vadd.f32 %v4633_v39, %v2470_v26  ;;  %v2491_v9 = vadd.f32 %v4633_v39, %v2490_v2 }
 0x161   : > { %v2205_v49 = vadd.f32 %v4451_v50, %v2197_v42  ;;  %v3044_v61 = vpack.c.bf16 %v2468_v41, %v2466_v60  ;;  %v3064_v10 = vpack.c.bf16 %v2488_v20, %v2486_v51  ;;  %v3084_v7 = vpack.c.bf16 %v2508_v25, %v2506_v29  ;;  %v2450_v43 = vpop.f32.mrf.mxu0  ;;  %v2472_v54 = vpop.f32.mrf.mxu1 }
 0x162   : > { %v2206_v44 = vadd.f32 %v4451_v50, %v2198_v47  ;;  %3025 = vst [vmem:[%s4665_s14] sm:$0xff] %v3024_v63   ;;  %v2451_v21 = vadd.f32 %v4633_v39, %v2450_v43  ;;  %v2473_v62 = vadd.f32 %v4633_v39, %v2472_v54  ;;  %v2511_v37 = vadd.f32 %v4633_v39, %v2510_v57 }
 0x163   : > { %v2213_v53 = vmax.f32 %v2205_v49, 0.0  ;;  %3126 = vst [vmem:[%s4665_s14 + $0x20] sm:$0xff] %v3044_v61  }
 0x164   : > { %v2214_v17 = vmax.f32 %v2206_v44, 0.0  ;;  %3130 = vst [vmem:[%s4665_s14 + $0x40] sm:$0xff] %v3064_v10   ;;  %v3049_v46 = vpack.c.bf16 %v2473_v62, %v2471_v15 }
 0x165   : > { %v2221_v12 = vmin.f32 %v2213_v53, 6.0  ;;  %3134 = vst [vmem:[%s4665_s14 + $0x60] sm:$0xff] %v3084_v7   ;;  %v2492_v19 = vpop.f32.mrf.mxu2 }
 0x166   : > { %v2222_v33 = vmin.f32 %v2214_v17, 6.0  ;;  %v2512_v1 = vpop.f32.mrf.mxu3  ;;  %v2493_v22 = vadd.f32 %v4633_v39, %v2492_v19  ;;  %3127 = vst [vmem:[%s4665_s14 + $0x28] sm:$0xff] %v3049_v46  }
 0x167   : > { %v2513_v28 = vadd.f32 %v4633_v39, %v2512_v1 }
 0x168   : > { %v3019_v8 = vpack.c.bf16 %v2222_v33, %v2221_v12  ;;  %v3069_v40 = vpack.c.bf16 %v2493_v22, %v2491_v9 }
 0x169   : > { %v2452_v50 = vpop.f32.mrf.mxu0  ;;  %v3089_v31 = vpack.c.bf16 %v2513_v28, %v2511_v37 }
 0x16a   : > { %3122 = vst [vmem:[#allocation2 + $0x28] sm:$0xff] %v3019_v8   ;;  %v2453_v27 = vadd.f32 %v4633_v39, %v2452_v50 }
 0x16b   : > { %3131 = vst [vmem:[%s4665_s14 + $0x48] sm:$0xff] %v3069_v40  }
 0x16c   : > { %v3029_v13 = vpack.c.bf16 %v2453_v27, %v2451_v21  ;;  %3135 = vst [vmem:[%s4665_s14 + $0x68] sm:$0xff] %v3089_v31  }
 0x16e   : > { %3123 = vst [vmem:[%s4665_s14 + $0x8] sm:$0xff] %v3029_v13  }
 0x171   : > { %v2883_v34 = vld [vmem:[#allocation2 + $0x28] sm:$0xff]  ;;  %v2455_v4 = vpop.f32.mrf.mxu0 }
 0x172   : > { %2519 = vmatmul.bf16.gmra.mxu3 %v2883_v34  ;;  %v2456_v18 = vadd.f32 %v4633_v39, %v2455_v4 }
 0x177   : > { %v2475_v35 = vpop.f32.mrf.mxu1 }
 0x178   : > { %v2476_v14 = vadd.f32 %v4633_v39, %v2475_v35 }
 0x179   : > { %v2457_v45 = vpop.f32.mrf.mxu0 }
 0x17a   : > { %v2458_v36 = vadd.f32 %v4633_v39, %v2457_v45 }
 0x17c   : > { %v3034_v23 = vpack.c.bf16 %v2458_v36, %v2456_v18 }
 0x17e   : > { %3124 = vst [vmem:[%s4665_s14 + $0x10] sm:$0xff] %v3034_v23  }
 0x17f   : > { %v2477_v55 = vpop.f32.mrf.mxu1 }
 0x180   : > { %v2478_v32 = vadd.f32 %v4633_v39, %v2477_v55 }
 0x182   : > { %v3054_v5 = vpack.c.bf16 %v2478_v32, %v2476_v14 }
 0x184   : > { %3128 = vst [vmem:[%s4665_s14 + $0x30] sm:$0xff] %v3054_v5  }
 0x191   : > { %v2495_v56 = vpop.f32.mrf.mxu2 }
 0x192   : > { %v2496_v0 = vadd.f32 %v4633_v39, %v2495_v56 }
 0x199   : > { %v2497_v3 = vpop.f32.mrf.mxu2 }
 0x19a   : > { %v2498_v52 = vadd.f32 %v4633_v39, %v2497_v3 }
 0x19c   : > { %v3074_v30 = vpack.c.bf16 %v2498_v52, %v2496_v0 }
 0x19e   : > { %3132 = vst [vmem:[%s4665_s14 + $0x50] sm:$0xff] %v3074_v30  }
 0x1a5   : > { %v2515_v38 = vpop.f32.mrf.mxu3 }
 0x1a6   : > { %v2516_v58 = vadd.f32 %v4633_v39, %v2515_v38 }
 0x1ad   : > { %v2517_v24 = vpop.f32.mrf.mxu3 }
 0x1ae   : > { %v2518_v6 = vadd.f32 %v4633_v39, %v2517_v24 }
 0x1b0   : > { %v3094_v48 = vpack.c.bf16 %v2518_v6, %v2516_v58 }
 0x1b2   : > { %3136 = vst [vmem:[%s4665_s14 + $0x70] sm:$0xff] %v3094_v48  }
 0x1b3   : > { %v2460_v60 = vpop.f32.mrf.mxu0 }
 0x1b4   : > { %v2461_v29 = vadd.f32 %v4633_v39, %v2460_v60 }
 0x1bb   : > { %v2462_v59 = vpop.f32.mrf.mxu0 }
 0x1bc   : > { %v2463_v42 = vadd.f32 %v4633_v39, %v2462_v59 }
 0x1be   : > { %v3039_v20 = vpack.c.bf16 %v2463_v42, %v2461_v29 }
 0x1c0   : > { %3125 = vst [vmem:[%s4665_s14 + $0x18] sm:$0xff] %v3039_v20  }
 0x1c7   : > { %v2480_v51 = vpop.f32.mrf.mxu1 }
 0x1c8   : > { %v2481_v11 = vadd.f32 %v4633_v39, %v2480_v51 }
 0x1cf   : > { %v2482_v16 = vpop.f32.mrf.mxu1 }
 0x1d0   : > { %v2483_v41 = vadd.f32 %v4633_v39, %v2482_v16 }
 0x1d2   : > { %v3059_v25 = vpack.c.bf16 %v2483_v41, %v2481_v11 }
 0x1d4   : > { %3129 = vst [vmem:[%s4665_s14 + $0x38] sm:$0xff] %v3059_v25  }
 0x1e1   : > { %v2500_v47 = vpop.f32.mrf.mxu2 }
 0x1e2   : > { %v2501_v49 = vadd.f32 %v4633_v39, %v2500_v47 }
 0x1e9   : > { %v2502_v63 = vpop.f32.mrf.mxu2 }
 0x1ea   : > { %v2503_v61 = vadd.f32 %v4633_v39, %v2502_v63 }
 0x1ec   : > { %v3079_v10 = vpack.c.bf16 %v2503_v61, %v2501_v49 }
 0x1ee   : > { %3133 = vst [vmem:[%s4665_s14 + $0x58] sm:$0xff] %v3079_v10  }
 0x1f5   : > { %v2520_v7 = vpop.f32.mrf.mxu3 }
 0x1f6   : > { %v2521_v53 = vadd.f32 %v4633_v39, %v2520_v7 }
 0x1fd   : > { %v2522_v44 = vpop.f32.mrf.mxu3 }
 0x1fe   : > { %v2523_v43 = vadd.f32 %v4633_v39, %v2522_v44 }
 0x200   : > { %v3099_v26 = vpack.c.bf16 %v2523_v43, %v2521_v53 }
 0x202   : > { %3137 = vst [vmem:[%s4665_s14 + $0x78] sm:$0xff] %v3099_v26  }
 0x203   : > { %3255 = shalt.err (!%p3252_p5)
}
 0x204   : > { %s3308_s12 = smov 64   ;;  %s3309_s14 = smov 4  }
 0x205   : > { %3164 = dma.vmem_to_hbm [thread:$0]  (%p3385_p4), %s2606_s19, 2048, %s2608_s20, %s2590_s27, %s3308_s12, %s3308_s12, %s3309_s14  }
 0x206 PF: > { %p3170_p6 = scmp.ge.s32.totalorder %s3306_s26, 2  ;;  %s2622_s17 = sand.u32 1, %s3286_s21  }
 0x207   : > { %s2623_s15 = scalar_lea.sflag [#allocation4], %s2622_s17 }
 0x208   : > { %p3167_p7 = pnand %p3170_p6, %p3392_p8 }
 0x20a   : > { %p3168_p9 = pneg %p3167_p7 }
 0x20c   : > { %3281 = dma.done.wait (%p3168_p9), %s2623_s15, 2048  }
 0x20d   : > { %3283 = vsyncadd (%p3168_p9), %s2623_s15, 4294965248  ;;  %s19_s26 = sadd.s32 1, %s3306_s26   ;;  %s4755_s21 = smov %s3290_s22 }
 0x20e   : > { %p16_p10 = scmp.ge.s32.totalorder %s19_s26, 4   ;;  %s4756_s22 = smov %s3294_s23 }
 0x20f   : > { %s4757_s23 = smov %s3398_s10  ;;  %s4758_s24 = smov %s3302_s25 }
 0x210   : > { %s4759_s25 = smov %s4761_s29  ;;  %18 = sbr.rel (!%p16_p10) target bundleno = 4 (0x4), region = 88 }
 0x215   :  { %2629 = vsyncpa [#allocation4], 1 }
 0x216   :  { %2631 = vsyncpa [#allocation4 + $0x1], 1 }

</bundles_post_ra>
